<compile_context>
chip_gen: v6e
topology: v6e:2x2x1
jax: 0.10.0
libtpu: 0.0.40
codegen_flags: <defaults>
</compile_context>

<pallas_src>
import functools

import jax
import jax.numpy as jnp
from jax.experimental import pallas as pl
from jax.experimental.pallas import tpu as pltpu

LN_EPS = 1e-5


def agent_encoder_kernel(x_ref, w1_ref, ln_ref, w2_ref, b2_ref, o_ref):
    # Linear 1 (MXU). x block arrives f32; cast to bf16 in VMEM (free VPU op).
    x = x_ref[...].astype(jnp.bfloat16)
    h = jnp.dot(x, w1_ref[...], preferred_element_type=jnp.float32)
    h = h + ln_ref[0:1, :]                      # bias b1

    # LayerNorm in f32, centered two-pass statistics (robust to large means).
    mean = jnp.mean(h, axis=-1, keepdims=True)
    hc = h - mean
    var = jnp.mean(hc * hc, axis=-1, keepdims=True)
    hn = hc * jax.lax.rsqrt(var + LN_EPS)
    hn = hn * ln_ref[1:2, :] + ln_ref[2:3, :]   # gamma, beta

    # ReLU (VPU).
    hn = jnp.maximum(hn, 0.0)

    # Linear 2 (MXU), ends with linear (no activation).
    out = jnp.dot(hn.astype(jnp.bfloat16), w2_ref[...],
                  preferred_element_type=jnp.float32)
    out = out + b2_ref[...]

    o_ref[...] = out.astype(o_ref.dtype)


def prepare_params(w1, b1, gamma, beta, w2, b2):
    """One-time parameter prep (outside the per-call hot path)."""
    hid = w1.shape[1]
    out_dim = w2.shape[1]
    w1b = w1.astype(jnp.bfloat16)                                   # (in_dim, hid)
    ln = jnp.stack([jnp.reshape(b1, (hid,)).astype(jnp.float32),
                    jnp.reshape(gamma, (hid,)).astype(jnp.float32),
                    jnp.reshape(beta, (hid,)).astype(jnp.float32)],
                   axis=0)                                          # (3, hid) f32
    w2b = w2.astype(jnp.bfloat16)                                   # (hid, out_dim)
    b2f = jnp.reshape(b2, (1, out_dim)).astype(jnp.float32)         # (1, out_dim)
    return w1b, ln, w2b, b2f


def _choose_tile_n(N, cap=8192):
    # Fewest even number of grid steps with tiles <= cap rows.
    for steps in (2, 4, 8, 16, 32, 64, 128, 256):
        tile = N // steps
        if N % steps == 0 and tile % 8 == 0 and tile <= cap:
            return tile
    return min(N, cap)


@functools.partial(jax.jit, static_argnames=("tile_n",))
def agent_encoder(x, w1b, ln, w2b, b2f, *, tile_n=None):
    N, in_dim = x.shape
    hid = w1b.shape[1]
    out_dim = w2b.shape[1]

    if tile_n is None:
        tile_n = _choose_tile_n(N)
    tile_n = min(tile_n, N)
    assert N % tile_n == 0, "N must be divisible by tile_n for this demo"
    assert tile_n % 8 == 0, "tile_n must be a multiple of 8 sublanes"

    grid = (N // tile_n,)

    # Advisory cost for XLA's scheduler around this small custom call.
    flops = 2 * N * in_dim * hid + 2 * N * hid * out_dim + 10 * N * hid
    bytes_accessed = (N * in_dim * 4 + N * out_dim * 4
                      + in_dim * hid * 2 + hid * out_dim * 2
                      + 3 * hid * 4 + out_dim * 4)
    cost = pl.CostEstimate(flops=flops, transcendentals=N,
                           bytes_accessed=bytes_accessed)

    return pl.pallas_call(
        agent_encoder_kernel,
        out_shape=jax.ShapeDtypeStruct((N, out_dim), x.dtype),
        grid_spec=pltpu.PrefetchScalarGridSpec(
            num_scalar_prefetch=0,
            grid=grid,
            in_specs=[
                # x: tile of rows, full (true) feature dim, f32 (cast in kernel)
                pl.BlockSpec((tile_n, in_dim), lambda i: (i, 0)),
                # parameters: full arrays, same block every grid step
                pl.BlockSpec((in_dim, hid), lambda i: (0, 0)),
                pl.BlockSpec((3, hid), lambda i: (0, 0)),
                pl.BlockSpec((hid, out_dim), lambda i: (0, 0)),
                pl.BlockSpec((1, out_dim), lambda i: (0, 0)),
            ],
            out_specs=pl.BlockSpec((tile_n, out_dim), lambda i: (i, 0)),
        ),
        compiler_params=pltpu.CompilerParams(
            dimension_semantics=("parallel",)),
        cost_estimate=cost,
    )(x, w1b, ln, w2b, b2f)


def reference(x, w1, b1, gamma, beta, w2, b2):
    # Matches the kernel's numerics: bf16 matmul operands, f32 accumulation,
    # f32 LayerNorm / ReLU.
    h = jnp.dot(x.astype(jnp.bfloat16), w1.astype(jnp.bfloat16),
                preferred_element_type=jnp.float32) + b1
    mean = jnp.mean(h, axis=-1, keepdims=True)
    var = jnp.mean((h - mean) ** 2, axis=-1, keepdims=True)
    h = (h - mean) * jax.lax.rsqrt(var + LN_EPS)
    h = h * gamma + beta
    h = jnp.maximum(h, 0.0)
    out = jnp.dot(h.astype(jnp.bfloat16), w2.astype(jnp.bfloat16),
                  preferred_element_type=jnp.float32) + b2
    return out.astype(x.dtype)


if __name__ == "__main__":
    # A set of agent feature vectors (N agents, in_dim features) -> (N, out_dim).
    N, in_dim, out_dim = 1024, 32, 64
    hid = out_dim  # MLP hidden width == out_dim

    key = jax.random.PRNGKey(0)
    kx, k1, k2, k3, k4 = jax.random.split(key, 5)

    x = jax.random.normal(kx, (N, in_dim), dtype=jnp.float32)

    # Deterministic parameter init (synthetic, not a checkpoint load).
    w1 = jax.random.normal(k1, (in_dim, hid), dtype=jnp.float32) * (1.0 / jnp.sqrt(in_dim))
    b1 = jax.random.normal(k2, (1, hid), dtype=jnp.float32) * 0.01
    gamma = jnp.ones((1, hid), dtype=jnp.float32)
    beta = jnp.zeros((1, hid), dtype=jnp.float32)
    w2 = jax.random.normal(k3, (hid, out_dim), dtype=jnp.float32) * (1.0 / jnp.sqrt(hid))
    b2 = jax.random.normal(k4, (1, out_dim), dtype=jnp.float32) * 0.01

    # One-time parameter prep (outside the jitted hot path).
    w1b, ln, w2b, b2f = prepare_params(w1, b1, gamma, beta, w2, b2)
    w1b, ln, w2b, b2f = jax.block_until_ready((w1b, ln, w2b, b2f))

    out = agent_encoder(x, w1b, ln, w2b, b2f)
    out = jax.block_until_ready(out)

    ref = reference(x, w1, b1, gamma, beta, w2, b2)
    assert out.shape == (N, out_dim)
    assert jnp.allclose(out, ref, atol=2e-2, rtol=2e-2), "mismatch vs reference"

    print("KERNEL_OK")
</pallas_src>

<mosaic_0001>
module attributes {stable_mosaic.version = 11 : i64} {
  func.func @agent_encoder_kernel(%arg0: i32, %arg1: memref<512x32xf32, #tpu.memory_space<vmem>>, %arg2: memref<32x64xbf16, #tpu.memory_space<vmem>>, %arg3: memref<3x64xf32, #tpu.memory_space<vmem>>, %arg4: memref<64x64xbf16, #tpu.memory_space<vmem>>, %arg5: memref<1x64xf32, #tpu.memory_space<vmem>>, %arg6: memref<512x64xf32, #tpu.memory_space<vmem>>) attributes {dimension_semantics = [#tpu.dimension_semantics<parallel>], iteration_bounds = array<i64: 2>, scalar_prefetch = 0 : i64, scratch_operands = 0 : i64, tpu.core_type = #tpu.core_type<tc>, window_params = [{transform_indices = @transform_0, window_bounds = array<i64: 512, 32>}, {pipeline_mode = #tpu.pipeline_mode<synchronous>, transform_indices = @transform_1, window_bounds = array<i64: 32, 64>}, {pipeline_mode = #tpu.pipeline_mode<synchronous>, transform_indices = @transform_2, window_bounds = array<i64: 3, 64>}, {pipeline_mode = #tpu.pipeline_mode<synchronous>, transform_indices = @transform_3, window_bounds = array<i64: 64, 64>}, {pipeline_mode = #tpu.pipeline_mode<synchronous>, transform_indices = @transform_4, window_bounds = array<i64: 1, 64>}, {transform_indices = @transform_5, window_bounds = array<i64: 512, 64>}]} {
    %c0 = arith.constant 0 : index
    %c0_0 = arith.constant 0 : index
    %0 = vector.load %arg1[%c0, %c0_0] : memref<512x32xf32, #tpu.memory_space<vmem>>, vector<512x32xf32>
    %1 = arith.truncf %0 : vector<512x32xf32> to vector<512x32xbf16>
    %c0_1 = arith.constant 0 : index
    %c0_2 = arith.constant 0 : index
    %2 = vector.load %arg2[%c0_1, %c0_2] : memref<32x64xbf16, #tpu.memory_space<vmem>>, vector<32x64xbf16>
    %cst = arith.constant dense<0.000000e+00> : vector<512x64xf32>
    %3 = tpu.matmul %1, %2, %cst {dimension_numbers = #tpu.dot_dimension_numbers<[1], [0], [0], [1], [0, 0, 1, 1], [], []>} : vector<512x32xbf16>, vector<32x64xbf16>, vector<512x64xf32> -> vector<512x64xf32>
    %c0_3 = arith.constant 0 : index
    %c0_4 = arith.constant 0 : index
    %4 = vector.load %arg3[%c0_3, %c0_4] : memref<3x64xf32, #tpu.memory_space<vmem>>, vector<1x64xf32>
    %5 = vector.broadcast %4 : vector<1x64xf32> to vector<512x64xf32>
    %6 = arith.addf %3, %5 : vector<512x64xf32>
    %cst_5 = arith.constant dense<0.000000e+00> : vector<512xf32>
    %7 = vector.multi_reduction <add>, %6, %cst_5 [1] : vector<512x64xf32> to vector<512xf32>
    %8 = vector.shape_cast %7 : vector<512xf32> to vector<512x1xf32>
    %cst_6 = arith.constant 6.400000e+01 : f32
    %9 = vector.broadcast %cst_6 : f32 to vector<512x1xf32>
    %10 = arith.divf %8, %9 : vector<512x1xf32>
    %11 = vector.broadcast %10 : vector<512x1xf32> to vector<512x64xf32>
    %12 = arith.subf %6, %11 : vector<512x64xf32>
    %13 = arith.mulf %12, %12 : vector<512x64xf32>
    %cst_7 = arith.constant dense<0.000000e+00> : vector<512xf32>
    %14 = vector.multi_reduction <add>, %13, %cst_7 [1] : vector<512x64xf32> to vector<512xf32>
    %15 = vector.shape_cast %14 : vector<512xf32> to vector<512x1xf32>
    %cst_8 = arith.constant 6.400000e+01 : f32
    %16 = vector.broadcast %cst_8 : f32 to vector<512x1xf32>
    %17 = arith.divf %15, %16 : vector<512x1xf32>
    %cst_9 = arith.constant 9.99999974E-6 : f32
    %18 = vector.broadcast %cst_9 : f32 to vector<512x1xf32>
    %19 = arith.addf %17, %18 : vector<512x1xf32>
    %20 = math.rsqrt %19 : vector<512x1xf32>
    %21 = vector.broadcast %20 : vector<512x1xf32> to vector<512x64xf32>
    %22 = arith.mulf %12, %21 : vector<512x64xf32>
    %c1 = arith.constant 1 : index
    %c0_10 = arith.constant 0 : index
    %23 = vector.load %arg3[%c1, %c0_10] : memref<3x64xf32, #tpu.memory_space<vmem>>, vector<1x64xf32>
    %24 = vector.broadcast %23 : vector<1x64xf32> to vector<512x64xf32>
    %25 = arith.mulf %22, %24 : vector<512x64xf32>
    %c2 = arith.constant 2 : index
    %c0_11 = arith.constant 0 : index
    %26 = vector.load %arg3[%c2, %c0_11] : memref<3x64xf32, #tpu.memory_space<vmem>>, vector<1x64xf32>
    %27 = vector.broadcast %26 : vector<1x64xf32> to vector<512x64xf32>
    %28 = arith.addf %25, %27 : vector<512x64xf32>
    %cst_12 = arith.constant 0.000000e+00 : f32
    %29 = vector.broadcast %cst_12 : f32 to vector<512x64xf32>
    %30 = arith.maximumf %28, %29 : vector<512x64xf32>
    %31 = arith.truncf %30 : vector<512x64xf32> to vector<512x64xbf16>
    %c0_13 = arith.constant 0 : index
    %c0_14 = arith.constant 0 : index
    %32 = vector.load %arg4[%c0_13, %c0_14] : memref<64x64xbf16, #tpu.memory_space<vmem>>, vector<64x64xbf16>
    %cst_15 = arith.constant dense<0.000000e+00> : vector<512x64xf32>
    %33 = tpu.matmul %31, %32, %cst_15 {dimension_numbers = #tpu.dot_dimension_numbers<[1], [0], [0], [1], [0, 0, 1, 1], [], []>} : vector<512x64xbf16>, vector<64x64xbf16>, vector<512x64xf32> -> vector<512x64xf32>
    %c0_16 = arith.constant 0 : index
    %c0_17 = arith.constant 0 : index
    %34 = vector.load %arg5[%c0_16, %c0_17] : memref<1x64xf32, #tpu.memory_space<vmem>>, vector<1x64xf32>
    %35 = vector.broadcast %34 : vector<1x64xf32> to vector<512x64xf32>
    %36 = arith.addf %33, %35 : vector<512x64xf32>
    %c0_18 = arith.constant 0 : index
    %c0_19 = arith.constant 0 : index
    %37 = vector.load %arg6[%c0_18, %c0_19] : memref<512x64xf32, #tpu.memory_space<vmem>>, vector<512x64xf32>
    tpu.vector_store %arg6[%c0_18, %c0_19], %36 {strides = array<i32>} : memref<512x64xf32, #tpu.memory_space<vmem>>, vector<512x64xf32>,
    return
  }
  func.func @transform_0(%arg0: i32) -> (i32, i32) {
    %c0_i32 = arith.constant 0 : i32
    %c0_i32_0 = arith.constant 0 : i32
    return %arg0, %c0_i32 : i32, i32
  }
  func.func @transform_1(%arg0: i32) -> (i32, i32) {
    %c0_i32 = arith.constant 0 : i32
    %c0_i32_0 = arith.constant 0 : i32
    %c0_i32_1 = arith.constant 0 : i32
    return %c0_i32, %c0_i32_0 : i32, i32
  }
  func.func @transform_2(%arg0: i32) -> (i32, i32) {
    %c0_i32 = arith.constant 0 : i32
    %c0_i32_0 = arith.constant 0 : i32
    %c0_i32_1 = arith.constant 0 : i32
    return %c0_i32, %c0_i32_0 : i32, i32
  }
  func.func @transform_3(%arg0: i32) -> (i32, i32) {
    %c0_i32 = arith.constant 0 : i32
    %c0_i32_0 = arith.constant 0 : i32
    %c0_i32_1 = arith.constant 0 : i32
    return %c0_i32, %c0_i32_0 : i32, i32
  }
  func.func @transform_4(%arg0: i32) -> (i32, i32) {
    %c0_i32 = arith.constant 0 : i32
    %c0_i32_0 = arith.constant 0 : i32
    %c0_i32_1 = arith.constant 0 : i32
    return %c0_i32, %c0_i32_0 : i32, i32
  }
  func.func @transform_5(%arg0: i32) -> (i32, i32) {
    %c0_i32 = arith.constant 0 : i32
    %c0_i32_0 = arith.constant 0 : i32
    return %arg0, %c0_i32 : i32, i32
  }
}

</mosaic_0001>

<bundles_post_ra>
// kernel: agent_encoder.1
= control target key start
LH: loop header
LB: loop body
LE: loop exit
PB: predicated region body
PF: predicated region fallthrough
CT: control target
= control target key end

     0   :  { %s2821_s18 = smov 0   ;;  %s4119_s0 = inlined_call_operand.vmem [shape: f32[1024,32], index: 0, kind: input, shape index: {}]   ;;  %s4120_s1 = inlined_call_operand.vmem [shape: bf16[32,64], index: 1, kind: input, shape index: {}]   ;;  %s4121_s2 = inlined_call_operand.vmem [shape: f32[3,64], index: 2, kind: input, shape index: {}]   ;;  %s4122_s3 = inlined_call_operand.vmem [shape: bf16[64,64], index: 3, kind: input, shape index: {}]   ;;  %s4123_s4 = inlined_call_operand.vmem [shape: f32[1,64], index: 4, kind: input, shape index: {}]   ;;  %s4124_s5 = inlined_call_operand.vmem [shape: f32[1024,64], index: 5, kind: output, shape index: {}]  }
   0x1 LB: > { %s2344_s19 = sadd.s32 4294967295, %s2789_s18   ;;  %p2348_p0 = scmp.ge.s32.totalorder %s2789_s18, 1  ;;  %s2789_s18 = sphi %s2821_s18, %s15_s18  }
   0x2   : > { %p188_p1 = scmp.lt.s32.totalorder %s2789_s18, 3 }
   0x4   : > { %p189_p2 = pnand %p2348_p0, %p188_p1 }
   0x6   : > { %192 = sbr.rel (%p189_p2) target bundleno = 927 (0x39f), region = 40 }
   0xb   : > { %v2647_v0 = vld [vmem:[%s4120_s1 + $0x8] sm:$0xff]   ;;  %s2349_s22 = sshll.u32 %s2344_s19, 6  ;;  %v2648_v1 = vld [vmem:[%s4120_s1] sm:$0xff]   ;;  %vm346_vm0 = vcmask 261120   ;;  %vm732_vm1 = vcmask 523264  }
   0xc   : > { %p217_p3 = scmp.lt.s32.totalorder %s2349_s22, 127  ;;  %2499 = vmatprep.subr.bf16.mxu0 %v2647_v0 }
   0xd   : > { %2500 = vmatpush3.bf16.msra.mxu0 %v2647_v0 }
   0xe   : > { %s4237_s22 = smov (!%p217_p3, %s2349_s22), 127  ;;  %2501 = vmatprep.subr.bf16.mxu0 %v2648_v1 }
   0xf   : > { %s2350_s25 = sshll.u32 %s4237_s22, 3 }
  0x10   : > { %s2843_s28 = scalar_lea.vmem %s4119_s0, %s2350_s25  ;;  %s3922_s29 = scalar_lea.vmem %s4124_s5, %s2350_s25 }
  0x11   : > { %2502 = vmatpush3.bf16.msra.mxu0 %v2648_v1  ;;  %v229_v2 = vld [vmem:[%s2843_s28] sm:$0xff]  ;;  %v230_v3 = vld [vmem:[%s2843_s28 + $0x8] sm:$0xff]  ;;  %v231_v4 = vld [vmem:[%s2843_s28 + $0x10] sm:$0xff] }
  0x12   : > { %v293_v5 = vpack.c.bf16 %v230_v3, %v229_v2  ;;  %v232_v6 = vld [vmem:[%s2843_s28 + $0x18] sm:$0xff]  ;;  %v233_v7 = vld [vmem:[%s2843_s28 + $0x20] sm:$0xff]  ;;  %v234_v8 = vld [vmem:[%s2843_s28 + $0x28] sm:$0xff] }
  0x13   : > { %v294_v9 = vpack.c.bf16 %v232_v6, %v231_v4  ;;  %v295_v10 = vpack.c.bf16 %v234_v8, %v233_v7  ;;  %v235_v11 = vld [vmem:[%s2843_s28 + $0x30] sm:$0xff]  ;;  %v236_v12 = vld [vmem:[%s2843_s28 + $0x38] sm:$0xff]  ;;  %v237_v13 = vld [vmem:[%s2843_s28 + $0x40] sm:$0xff] }
  0x14   : > { %2503 = vmatprep.mubr.msk.bf16.mxu0 %vm346_vm0, %v293_v5  ;;  %v238_v14 = vld [vmem:[%s2843_s28 + $0x48] sm:$0xff]  ;;  %v296_v15 = vpack.c.bf16 %v236_v12, %v235_v11  ;;  %v239_v17 = vld [vmem:[%s2843_s28 + $0x50] sm:$0xff]  ;;  %v240_v18 = vld [vmem:[%s2843_s28 + $0x58] sm:$0xff] }
  0x15   : > { %2504 = vmatmul.mubr.msk.bf16.vlgmr.msra.gmra.mxu0 %vm346_vm0, %v294_v9  ;;  %v297_v16 = vpack.c.bf16 %v238_v14, %v237_v13  ;;  %v241_v19 = vld [vmem:[%s2843_s28 + $0x60] sm:$0xff]  ;;  %v242_v20 = vld [vmem:[%s2843_s28 + $0x68] sm:$0xff]  ;;  %v298_v21 = vpack.c.bf16 %v240_v18, %v239_v17  ;;  %v243_v23 = vld [vmem:[%s2843_s28 + $0x70] sm:$0xff] }
  0x16   : > { %2507 = vmatprep.mubr.msk.bf16.mxu0 %vm346_vm0, %v295_v10  ;;  %v299_v22 = vpack.c.bf16 %v242_v20, %v241_v19  ;;  %v244_v24 = vld [vmem:[%s2843_s28 + $0x78] sm:$0xff]  ;;  %v245_v25 = vld [vmem:[%s2843_s28 + $0x80] sm:$0xff]  ;;  %v246_v26 = vld [vmem:[%s2843_s28 + $0x88] sm:$0xff] }
  0x17   : > { %v300_v27 = vpack.c.bf16 %v244_v24, %v243_v23  ;;  %v301_v28 = vpack.c.bf16 %v246_v26, %v245_v25  ;;  %v247_v29 = vld [vmem:[%s2843_s28 + $0x90] sm:$0xff]  ;;  %v248_v30 = vld [vmem:[%s2843_s28 + $0x98] sm:$0xff]  ;;  %v249_v31 = vld [vmem:[%s2843_s28 + $0xa0] sm:$0xff] }
  0x18   : > { %v250_v32 = vld [vmem:[%s2843_s28 + $0xa8] sm:$0xff]  ;;  %v302_v33 = vpack.c.bf16 %v248_v30, %v247_v29  ;;  %v251_v35 = vld [vmem:[%s2843_s28 + $0xb0] sm:$0xff]  ;;  %v252_v36 = vld [vmem:[%s2843_s28 + $0xb8] sm:$0xff] }
  0x19   : > { %v303_v34 = vpack.c.bf16 %v250_v32, %v249_v31  ;;  %v253_v37 = vld [vmem:[%s2843_s28 + $0xc0] sm:$0xff]  ;;  %v254_v38 = vld [vmem:[%s2843_s28 + $0xc8] sm:$0xff]  ;;  %v304_v39 = vpack.c.bf16 %v252_v36, %v251_v35  ;;  %v255_v41 = vld [vmem:[%s2843_s28 + $0xd0] sm:$0xff] }
  0x1a   : > { %v305_v40 = vpack.c.bf16 %v254_v38, %v253_v37  ;;  %v256_v42 = vld [vmem:[%s2843_s28 + $0xd8] sm:$0xff]  ;;  %v257_v43 = vld [vmem:[%s2843_s28 + $0xe0] sm:$0xff]  ;;  %v258_v44 = vld [vmem:[%s2843_s28 + $0xe8] sm:$0xff] }
  0x1b   : > { %v306_v45 = vpack.c.bf16 %v256_v42, %v255_v41  ;;  %v307_v46 = vpack.c.bf16 %v258_v44, %v257_v43  ;;  %v259_v47 = vld [vmem:[%s2843_s28 + $0xf0] sm:$0xff]  ;;  %v260_v48 = vld [vmem:[%s2843_s28 + $0xf8] sm:$0xff]  ;;  %v261_v49 = vld [vmem:[%s2843_s28 + $0x100] sm:$0xff] }
  0x1c   : > { %v262_v50 = vld [vmem:[%s2843_s28 + $0x108] sm:$0xff]  ;;  %v308_v51 = vpack.c.bf16 %v260_v48, %v259_v47  ;;  %v263_v53 = vld [vmem:[%s2843_s28 + $0x110] sm:$0xff]  ;;  %v264_v54 = vld [vmem:[%s2843_s28 + $0x118] sm:$0xff] }
  0x1d   : > { %2508 = vmatmul.mubr.msk.bf16.gmra.mxu0 %vm346_vm0, %v296_v15  ;;  %v309_v52 = vpack.c.bf16 %v262_v50, %v261_v49  ;;  %v265_v55 = vld [vmem:[%s2843_s28 + $0x120] sm:$0xff]  ;;  %v266_v56 = vld [vmem:[%s2843_s28 + $0x128] sm:$0xff]  ;;  %v310_v57 = vpack.c.bf16 %v264_v54, %v263_v53  ;;  %v267_v59 = vld [vmem:[%s2843_s28 + $0x130] sm:$0xff] }
  0x1e   : > { %2511 = vmatprep.mubr.msk.bf16.mxu0 %vm346_vm0, %v297_v16  ;;  %v311_v58 = vpack.c.bf16 %v266_v56, %v265_v55  ;;  %v268_v60 = vld [vmem:[%s2843_s28 + $0x138] sm:$0xff]  ;;  %v269_v61 = vld [vmem:[%s2843_s28 + $0x140] sm:$0xff]  ;;  %v270_v62 = vld [vmem:[%s2843_s28 + $0x148] sm:$0xff] }
  0x1f   : > { %v312_v63 = vpack.c.bf16 %v268_v60, %v267_v59  ;;  %v313_v0 = vpack.c.bf16 %v270_v62, %v269_v61  ;;  %v271_v1 = vld [vmem:[%s2843_s28 + $0x150] sm:$0xff]  ;;  %v272_v2 = vld [vmem:[%s2843_s28 + $0x158] sm:$0xff]  ;;  %v273_v3 = vld [vmem:[%s2843_s28 + $0x160] sm:$0xff] }
  0x20   : > { %v274_v4 = vld [vmem:[%s2843_s28 + $0x168] sm:$0xff]  ;;  %v314_v5 = vpack.c.bf16 %v272_v2, %v271_v1  ;;  %v275_v7 = vld [vmem:[%s2843_s28 + $0x170] sm:$0xff]  ;;  %v276_v8 = vld [vmem:[%s2843_s28 + $0x178] sm:$0xff] }
  0x21   : > { %v315_v6 = vpack.c.bf16 %v274_v4, %v273_v3  ;;  %v277_v9 = vld [vmem:[%s2843_s28 + $0x180] sm:$0xff]  ;;  %v278_v10 = vld [vmem:[%s2843_s28 + $0x188] sm:$0xff]  ;;  %v316_v11 = vpack.c.bf16 %v276_v8, %v275_v7  ;;  %v279_v13 = vld [vmem:[%s2843_s28 + $0x190] sm:$0xff] }
  0x22   : > { %v317_v12 = vpack.c.bf16 %v278_v10, %v277_v9  ;;  %v280_v14 = vld [vmem:[%s2843_s28 + $0x198] sm:$0xff]  ;;  %v281_v15 = vld [vmem:[%s2843_s28 + $0x1a0] sm:$0xff]  ;;  %v282_v16 = vld [vmem:[%s2843_s28 + $0x1a8] sm:$0xff] }
  0x23   : > { %v318_v17 = vpack.c.bf16 %v280_v14, %v279_v13  ;;  %v319_v18 = vpack.c.bf16 %v282_v16, %v281_v15  ;;  %v283_v19 = vld [vmem:[%s2843_s28 + $0x1b0] sm:$0xff]  ;;  %v284_v20 = vld [vmem:[%s2843_s28 + $0x1b8] sm:$0xff] }
  0x24   : > { %v320_v23 = vpack.c.bf16 %v284_v20, %v283_v19  ;;  %v287_v25 = vld [vmem:[%s2843_s28 + $0x1d0] sm:$0xff]  ;;  %v288_v26 = vld [vmem:[%s2843_s28 + $0x1d8] sm:$0xff] }
  0x25   : > { %2512 = vmatmul.mubr.msk.bf16.gmra.mxu0 %vm346_vm0, %v298_v21  ;;  %v285_v21 = vld [vmem:[%s2843_s28 + $0x1c0] sm:$0xff]  ;;  %v322_v29 = vpack.c.bf16 %v288_v26, %v287_v25  ;;  %v291_v31 = vld [vmem:[%s2843_s28 + $0x1f0] sm:$0xff]  ;;  %v292_v32 = vld [vmem:[%s2843_s28 + $0x1f8] sm:$0xff] }
  0x26   : > { %2515 = vmatprep.mubr.msk.bf16.mxu0 %vm346_vm0, %v299_v22  ;;  %v286_v22 = vld [vmem:[%s2843_s28 + $0x1c8] sm:$0xff] }
  0x27   : > { %v321_v24 = vpack.c.bf16 %v286_v22, %v285_v21 }
  0x2d   : > { %2516 = vmatmul.mubr.msk.bf16.gmra.mxu0 %vm346_vm0, %v300_v27  ;;  %v289_v27 = vld [vmem:[%s2843_s28 + $0x1e0] sm:$0xff] }
  0x2e   : > { %2519 = vmatprep.mubr.msk.bf16.mxu0 %vm346_vm0, %v301_v28  ;;  %v290_v28 = vld [vmem:[%s2843_s28 + $0x1e8] sm:$0xff] }
  0x2f   : > { %v323_v30 = vpack.c.bf16 %v290_v28, %v289_v27 }
  0x35   : > { %2520 = vmatmul.mubr.msk.bf16.gmra.mxu0 %vm346_vm0, %v302_v33  ;;  %v324_v33 = vpack.c.bf16 %v292_v32, %v291_v31 }
  0x36   : > { %2523 = vmatprep.mubr.msk.bf16.mxu0 %vm346_vm0, %v303_v34  ;;  %v2944_v34 = vld [vmem:[%s4121_s2] ss:$0 sm:$0xff] }
  0x3d   : > { %2524 = vmatmul.mubr.msk.bf16.gmra.mxu0 %vm346_vm0, %v304_v39 }
  0x3e   : > { %2527 = vmatprep.mubr.msk.bf16.mxu0 %vm346_vm0, %v305_v40 }
  0x45   : > { %2528 = vmatmul.mubr.msk.bf16.gmra.mxu0 %vm346_vm0, %v306_v45 }
  0x46   : > { %2531 = vmatprep.mubr.msk.bf16.mxu0 %vm346_vm0, %v307_v46 }
  0x4d   : > { %2532 = vmatmul.mubr.msk.bf16.gmra.mxu0 %vm346_vm0, %v308_v51 }
  0x4e   : > { %2535 = vmatprep.mubr.msk.bf16.mxu0 %vm346_vm0, %v309_v52 }
  0x55   : > { %2536 = vmatmul.mubr.msk.bf16.gmra.mxu0 %vm346_vm0, %v310_v57 }
  0x56   : > { %2539 = vmatprep.mubr.msk.bf16.mxu0 %vm346_vm0, %v311_v58 }
  0x5d   : > { %2540 = vmatmul.mubr.msk.bf16.gmra.mxu0 %vm346_vm0, %v312_v63 }
  0x5e   : > { %2543 = vmatprep.mubr.msk.bf16.mxu0 %vm346_vm0, %v313_v0 }
  0x65   : > { %2544 = vmatmul.mubr.msk.bf16.gmra.mxu0 %vm346_vm0, %v314_v5 }
  0x66   : > { %2547 = vmatprep.mubr.msk.bf16.mxu0 %vm346_vm0, %v315_v6 }
  0x6d   : > { %2548 = vmatmul.mubr.msk.bf16.gmra.mxu0 %vm346_vm0, %v316_v11 }
  0x6e   : > { %2551 = vmatprep.mubr.msk.bf16.mxu0 %vm346_vm0, %v317_v12 }
  0x75   : > { %2552 = vmatmul.mubr.msk.bf16.gmra.mxu0 %vm346_vm0, %v318_v17 }
  0x76   : > { %2555 = vmatprep.mubr.msk.bf16.mxu0 %vm346_vm0, %v319_v18 }
  0x7d   : > { %2556 = vmatmul.mubr.msk.bf16.gmra.mxu0 %vm346_vm0, %v320_v23 }
  0x7e   : > { %2559 = vmatprep.mubr.msk.bf16.mxu0 %vm346_vm0, %v321_v24 }
  0x85   : > { %2560 = vmatmul.mubr.msk.bf16.gmra.mxu0 %vm346_vm0, %v322_v29 }
  0x86   : > { %2563 = vmatprep.mubr.msk.bf16.mxu0 %vm346_vm0, %v323_v30 }
  0x8d   : > { %2564 = vmatmul.mubr.msk.bf16.gmra.mxu0 %vm346_vm0, %v324_v33 }
  0xd5   : > { %v2505_v35 = vpop.f32.mrf.mxu0 }
  0xd6   : > { %v2947_v36 = vadd.f32 %v2505_v35, %v2944_v34 }
  0xd7   : > { %v477_v37 = vpop.f32.mrf.mxu0 }
  0xd8   : > { %v2950_v38 = vadd.f32 %v2944_v34, %v477_v37  ;;  %v739_v39 = vsel %vm732_vm1, %v2947_v36, 0.0 }
  0xd9   : > { %740 = vadd.xlane.f32.xlu1 %v739_v39  ;;  %v2506_v40 = vpop.f32.mrf.mxu0 }
  0xda   : > { %v2955_v41 = vadd.f32 %v2506_v40, %v2944_v34  ;;  %v733_v42 = vsel %vm732_vm1, %v2950_v38, 0.0 }
  0xdb   : > { %v480_v43 = vpop.f32.mrf.mxu0  ;;  %734 = vadd.xlane.f32.xlu0 %v733_v42 }
  0xdc   : > { %v2960_v44 = vadd.f32 %v2944_v34, %v480_v43  ;;  %v742_v45 = vsel %vm732_vm1, %v2955_v41, 0.0 }
  0xdd   : > { %743 = vadd.xlane.f32.xlu1 %v742_v45  ;;  %v2509_v46 = vpop.f32.mrf.mxu0 }
  0xde   : > { %v2965_v47 = vadd.f32 %v2509_v46, %v2944_v34  ;;  %v736_v48 = vsel %vm732_vm1, %v2960_v44, 0.0 }
  0xdf   : > { %v493_v49 = vpop.f32.mrf.mxu0  ;;  %737 = vadd.xlane.f32.xlu0 %v736_v48 }
  0xe0   : > { %v2970_v51 = vadd.f32 %v2944_v34, %v493_v49  ;;  %v751_v53 = vsel %vm732_vm1, %v2965_v47, 0.0 }
  0xe1   : > { %v2510_v50 = vpop.f32.mrf.mxu0 }
  0xe2   : > { %v2973_v52 = vadd.f32 %v2510_v50, %v2944_v34  ;;  %v745_v59 = vsel %vm732_vm1, %v2970_v51, 0.0 }
  0xe3   : > { %v496_v54 = vpop.f32.mrf.mxu0  ;;  %752 = vadd.xlane.f32.xlu0 %v751_v53 }
  0xe4   : > { %v2978_v55 = vadd.f32 %v2944_v34, %v496_v54  ;;  %v754_v56 = vsel %vm732_vm1, %v2973_v52, 0.0 }
  0xe5   : > { %755 = vadd.xlane.f32.xlu1 %v754_v56  ;;  %v2513_v57 = vpop.f32.mrf.mxu0 }
  0xe6   : > { %v2983_v58 = vadd.f32 %v2513_v57, %v2944_v34  ;;  %v748_v61 = vsel %vm732_vm1, %v2978_v55, 0.0 }
  0xe7   : > { %v509_v60 = vpop.f32.mrf.mxu0  ;;  %746 = vadd.xlane.f32.xlu0 %v745_v59 }
  0xe8   : > { %v2990_v63 = vadd.f32 %v2944_v34, %v509_v60  ;;  %v763_v1 = vsel %vm732_vm1, %v2983_v58, 0.0 }
  0xe9   : > { %v2514_v62 = vpop.f32.mrf.mxu0  ;;  %749 = vadd.xlane.f32.xlu1 %v748_v61 }
  0xea   : > { %v2993_v0 = vadd.f32 %v2514_v62, %v2944_v34  ;;  %v757_v7 = vsel %vm732_vm1, %v2990_v63, 0.0 }
  0xeb   : > { %v512_v2 = vpop.f32.mrf.mxu0  ;;  %764 = vadd.xlane.f32.xlu0 %v763_v1 }
  0xec   : > { %v2998_v3 = vadd.f32 %v2944_v34, %v512_v2  ;;  %v766_v4 = vsel %vm732_vm1, %v2993_v0, 0.0 }
  0xed   : > { %v2517_v5 = vpop.f32.mrf.mxu0  ;;  %767 = vadd.xlane.f32.xlu1 %v766_v4 }
  0xee   : > { %v3003_v6 = vadd.f32 %v2517_v5, %v2944_v34  ;;  %v760_v9 = vsel %vm732_vm1, %v2998_v3, 0.0 }
  0xef   : > { %v525_v8 = vpop.f32.mrf.mxu0  ;;  %758 = vadd.xlane.f32.xlu0 %v757_v7 }
  0xf0   : > { %v3010_v11 = vadd.f32 %v2944_v34, %v525_v8  ;;  %v775_v13 = vsel %vm732_vm1, %v3003_v6, 0.0 }
  0xf1   : > { %v2518_v10 = vpop.f32.mrf.mxu0  ;;  %761 = vadd.xlane.f32.xlu1 %v760_v9 }
  0xf2   : > { %v3013_v12 = vadd.f32 %v2518_v10, %v2944_v34  ;;  %v769_v19 = vsel %vm732_vm1, %v3010_v11, 0.0 }
  0xf3   : > { %v528_v14 = vpop.f32.mrf.mxu0  ;;  %776 = vadd.xlane.f32.xlu0 %v775_v13 }
  0xf4   : > { %v3018_v15 = vadd.f32 %v2944_v34, %v528_v14  ;;  %v778_v16 = vsel %vm732_vm1, %v3013_v12, 0.0 }
  0xf5   : > { %v2521_v17 = vpop.f32.mrf.mxu0  ;;  %779 = vadd.xlane.f32.xlu1 %v778_v16 }
  0xf6   : > { %v3023_v18 = vadd.f32 %v2521_v17, %v2944_v34  ;;  %v772_v21 = vsel %vm732_vm1, %v3018_v15, 0.0 }
  0xf7   : > { %v541_v20 = vpop.f32.mrf.mxu0  ;;  %770 = vadd.xlane.f32.xlu0 %v769_v19 }
  0xf8   : > { %v3030_v23 = vadd.f32 %v2944_v34, %v541_v20  ;;  %v787_v25 = vsel %vm732_vm1, %v3023_v18, 0.0 }
  0xf9   : > { %v2522_v22 = vpop.f32.mrf.mxu0  ;;  %773 = vadd.xlane.f32.xlu1 %v772_v21 }
  0xfa   : > { %v3033_v24 = vadd.f32 %v2522_v22, %v2944_v34  ;;  %v781_v31 = vsel %vm732_vm1, %v3030_v23, 0.0 }
  0xfb   : > { %v544_v26 = vpop.f32.mrf.mxu0  ;;  %788 = vadd.xlane.f32.xlu0 %v787_v25 }
  0xfc   : > { %v3038_v27 = vadd.f32 %v2944_v34, %v544_v26  ;;  %v790_v28 = vsel %vm732_vm1, %v3033_v24, 0.0 }
  0xfd   : > { %v2525_v29 = vpop.f32.mrf.mxu0  ;;  %791 = vadd.xlane.f32.xlu1 %v790_v28 }
  0xfe   : > { %v3043_v30 = vadd.f32 %v2525_v29, %v2944_v34  ;;  %v784_v33 = vsel %vm732_vm1, %v3038_v27, 0.0 }
  0xff   : > { %v557_v32 = vpop.f32.mrf.mxu0  ;;  %782 = vadd.xlane.f32.xlu0 %v781_v31 }
 0x100   : > { %v3050_v37 = vadd.f32 %v2944_v34, %v557_v32  ;;  %v799_v40 = vsel %vm732_vm1, %v3043_v30, 0.0 }
 0x101   : > { %v2526_v35 = vpop.f32.mrf.mxu0  ;;  %785 = vadd.xlane.f32.xlu1 %v784_v33 }
 0x102   : > { %v3053_v39 = vadd.f32 %v2526_v35, %v2944_v34  ;;  %v793_v49 = vsel %vm732_vm1, %v3050_v37, 0.0 }
 0x103   : > { %v560_v42 = vpop.f32.mrf.mxu0  ;;  %800 = vadd.xlane.f32.xlu0 %v799_v40 }
 0x104   : > { %v3058_v43 = vadd.f32 %v2944_v34, %v560_v42  ;;  %v802_v45 = vsel %vm732_vm1, %v3053_v39, 0.0 }
 0x105   : > { %v2529_v46 = vpop.f32.mrf.mxu0  ;;  %803 = vadd.xlane.f32.xlu1 %v802_v45 }
 0x106   : > { %v3063_v48 = vadd.f32 %v2529_v46, %v2944_v34  ;;  %v796_v54 = vsel %vm732_vm1, %v3058_v43, 0.0 }
 0x107   : > { %v573_v50 = vpop.f32.mrf.mxu0  ;;  %794 = vadd.xlane.f32.xlu0 %v793_v49 }
 0x108   : > { %v3068_v53 = vadd.f32 %v2944_v34, %v573_v50  ;;  %v811_v56 = vsel %vm732_vm1, %v3063_v48, 0.0 }
 0x109   : > { %v2530_v57 = vpop.f32.mrf.mxu0  ;;  %797 = vadd.xlane.f32.xlu1 %v796_v54 }
 0x10a   : > { %v3075_v59 = vadd.f32 %v2530_v57, %v2944_v34  ;;  %v805_v1 = vsel %vm732_vm1, %v3068_v53, 0.0 }
 0x10b   : > { %v576_v60 = vpop.f32.mrf.mxu0  ;;  %812 = vadd.xlane.f32.xlu0 %v811_v56 }
 0x10c   : > { %v3078_v61 = vadd.f32 %v2944_v34, %v576_v60  ;;  %v814_v62 = vsel %vm732_vm1, %v3075_v59, 0.0 }
 0x10d   : > { %v2533_v2 = vpop.f32.mrf.mxu0  ;;  %815 = vadd.xlane.f32.xlu1 %v814_v62 }
 0x10e   : > { %v3085_v4 = vadd.f32 %v2533_v2, %v2944_v34  ;;  %v808_v5 = vsel %vm732_vm1, %v3078_v61, 0.0 }
 0x10f   : > { %v589_v7 = vpop.f32.mrf.mxu0  ;;  %806 = vadd.xlane.f32.xlu0 %v805_v1 }
 0x110   : > { %v3090_v8 = vadd.f32 %v2944_v34, %v589_v7  ;;  %v823_v9 = vsel %vm732_vm1, %v3085_v4, 0.0 }
 0x111   : > { %v2534_v10 = vpop.f32.mrf.mxu0  ;;  %809 = vadd.xlane.f32.xlu1 %v808_v5 }
 0x112   : > { %v3095_v13 = vadd.f32 %v2534_v10, %v2944_v34  ;;  %v817_v19 = vsel %vm732_vm1, %v3090_v8, 0.0 }
 0x113   : > { %v592_v14 = vpop.f32.mrf.mxu0  ;;  %824 = vadd.xlane.f32.xlu0 %v823_v9 }
 0x114   : > { %v3098_v16 = vadd.f32 %v2944_v34, %v592_v14  ;;  %v826_v17 = vsel %vm732_vm1, %v3095_v13, 0.0 }
 0x115   : > { %v2537_v20 = vpop.f32.mrf.mxu0  ;;  %827 = vadd.xlane.f32.xlu1 %v826_v17 }
 0x116   : > { %v3105_v21 = vadd.f32 %v2537_v20, %v2944_v34  ;;  %v820_v22 = vsel %vm732_vm1, %v3098_v16, 0.0 }
 0x117   : > { %v605_v25 = vpop.f32.mrf.mxu0  ;;  %818 = vadd.xlane.f32.xlu0 %v817_v19 }
 0x118   : > { %v3110_v26 = vadd.f32 %v2944_v34, %v605_v25  ;;  %v835_v28 = vsel %vm732_vm1, %v3105_v21, 0.0 }
 0x119   : > { %v2538_v29 = vpop.f32.mrf.mxu0  ;;  %821 = vadd.xlane.f32.xlu1 %v820_v22 }
 0x11a   : > { %v3115_v31 = vadd.f32 %v2538_v29, %v2944_v34  ;;  %v829_v40 = vsel %vm732_vm1, %v3110_v26, 0.0 }
 0x11b   : > { %v608_v32 = vpop.f32.mrf.mxu0  ;;  %836 = vadd.xlane.f32.xlu0 %v835_v28 }
 0x11c   : > { %v3118_v33 = vadd.f32 %v2944_v34, %v608_v32  ;;  %v838_v35 = vsel %vm732_vm1, %v3115_v31, 0.0 }
 0x11d   : > { %v2541_v42 = vpop.f32.mrf.mxu0  ;;  %839 = vadd.xlane.f32.xlu1 %v838_v35 }
 0x11e   : > { %v3125_v45 = vadd.f32 %v2541_v42, %v2944_v34  ;;  %v832_v46 = vsel %vm732_vm1, %v3118_v33, 0.0 }
 0x11f   : > { %v621_v49 = vpop.f32.mrf.mxu0  ;;  %830 = vadd.xlane.f32.xlu0 %v829_v40 }
 0x120   : > { %v3130_v50 = vadd.f32 %v2944_v34, %v621_v49  ;;  %v847_v54 = vsel %vm732_vm1, %v3125_v45, 0.0 }
 0x121   : > { %v2542_v56 = vpop.f32.mrf.mxu0  ;;  %833 = vadd.xlane.f32.xlu1 %v832_v46 }
 0x122   : > { %v3135_v57 = vadd.f32 %v2542_v56, %v2944_v34  ;;  %v841_v2 = vsel %vm732_vm1, %v3130_v50, 0.0 }
 0x123   : > { %v624_v60 = vpop.f32.mrf.mxu0  ;;  %848 = vadd.xlane.f32.xlu0 %v847_v54 }
 0x124   : > { %v3138_v62 = vadd.f32 %v2944_v34, %v624_v60  ;;  %v850_v1 = vsel %vm732_vm1, %v3135_v57, 0.0 }
 0x125   : > { %v2545_v5 = vpop.f32.mrf.mxu0  ;;  %851 = vadd.xlane.f32.xlu1 %v850_v1 }
 0x126   : > { %v3145_v7 = vadd.f32 %v2545_v5, %v2944_v34  ;;  %v844_v9 = vsel %vm732_vm1, %v3138_v62, 0.0 }
 0x127   : > { %v637_v10 = vpop.f32.mrf.mxu0  ;;  %842 = vadd.xlane.f32.xlu0 %v841_v2 }
 0x128   : > { %v3150_v14 = vadd.f32 %v2944_v34, %v637_v10  ;;  %v859_v17 = vsel %vm732_vm1, %v3145_v7, 0.0 }
 0x129   : > { %v2546_v19 = vpop.f32.mrf.mxu0  ;;  %845 = vadd.xlane.f32.xlu1 %v844_v9 }
 0x12a   : > { %v3155_v20 = vadd.f32 %v2546_v19, %v2944_v34  ;;  %v853_v29 = vsel %vm732_vm1, %v3150_v14, 0.0 }
 0x12b   : > { %v640_v22 = vpop.f32.mrf.mxu0  ;;  %860 = vadd.xlane.f32.xlu0 %v859_v17 }
 0x12c   : > { %v3158_v25 = vadd.f32 %v2944_v34, %v640_v22  ;;  %v862_v28 = vsel %vm732_vm1, %v3155_v20, 0.0 }
 0x12d   : > { %v2549_v32 = vpop.f32.mrf.mxu0  ;;  %863 = vadd.xlane.f32.xlu1 %v862_v28 }
 0x12e   : > { %v3165_v35 = vadd.f32 %v2549_v32, %v2944_v34  ;;  %v856_v40 = vsel %vm732_vm1, %v3158_v25, 0.0 }
 0x12f   : > { %v653_v42 = vpop.f32.mrf.mxu0  ;;  %854 = vadd.xlane.f32.xlu0 %v853_v29 }
 0x130   : > { %v3170_v46 = vadd.f32 %v2944_v34, %v653_v42  ;;  %v871_v49 = vsel %vm732_vm1, %v3165_v35, 0.0 }
 0x131   : > { %v2550_v54 = vpop.f32.mrf.mxu0  ;;  %857 = vadd.xlane.f32.xlu1 %v856_v40 }
 0x132   : > { %v3175_v56 = vadd.f32 %v2550_v54, %v2944_v34  ;;  %v865_v5 = vsel %vm732_vm1, %v3170_v46, 0.0 }
 0x133   : > { %v656_v60 = vpop.f32.mrf.mxu0  ;;  %872 = vadd.xlane.f32.xlu0 %v871_v49 }
 0x134   : > { %v3178_v1 = vadd.f32 %v2944_v34, %v656_v60  ;;  %v874_v2 = vsel %vm732_vm1, %v3175_v56, 0.0 }
 0x135   : > { %v2553_v9 = vpop.f32.mrf.mxu0  ;;  %875 = vadd.xlane.f32.xlu1 %v874_v2 }
 0x136   : > { %v3185_v10 = vadd.f32 %v2553_v9, %v2944_v34  ;;  %v868_v17 = vsel %vm732_vm1, %v3178_v1, 0.0 }
 0x137   : > { %v669_v19 = vpop.f32.mrf.mxu0  ;;  %866 = vadd.xlane.f32.xlu0 %v865_v5 }
 0x138   : > { %4162 = vst [vmem:[#allocation2_spill] sm:$0xff] %v3185_v10  ;;  %v3190_v22 = vadd.f32 %v2944_v34, %v669_v19  ;;  %v883_v28 = vsel %vm732_vm1, %v3185_v10, 0.0 }
 0x139   : > { %v2554_v29 = vpop.f32.mrf.mxu0  ;;  %869 = vadd.xlane.f32.xlu1 %v868_v17 }
 0x13a   : > { %4163 = vst [vmem:[#allocation3_spill] sm:$0xff] %v3190_v22  ;;  %v3195_v32 = vadd.f32 %v2554_v29, %v2944_v34  ;;  %v877_v54 = vsel %vm732_vm1, %v3190_v22, 0.0 }
 0x13b   : > { %v672_v40 = vpop.f32.mrf.mxu0  ;;  %884 = vadd.xlane.f32.xlu0 %v883_v28 }
 0x13c   : > { %4164 = vst [vmem:[#allocation4_spill] sm:$0xff] %v3195_v32  ;;  %v3198_v42 = vadd.f32 %v2944_v34, %v672_v40  ;;  %v886_v49 = vsel %vm732_vm1, %v3195_v32, 0.0 }
 0x13d   : > { %v2557_v60 = vpop.f32.mrf.mxu0  ;;  %887 = vadd.xlane.f32.xlu1 %v886_v49 }
 0x13e   : > { %4165 = vst [vmem:[#allocation5_spill] sm:$0xff] %v3198_v42  ;;  %v3205_v2 = vadd.f32 %v2557_v60, %v2944_v34  ;;  %v880_v5 = vsel %vm732_vm1, %v3198_v42, 0.0 }
 0x13f   : > { %v685_v9 = vpop.f32.mrf.mxu0  ;;  %878 = vadd.xlane.f32.xlu0 %v877_v54 }
 0x140   : > { %4166 = vst [vmem:[#allocation6_spill] sm:$0xff] %v3205_v2  ;;  %v3210_v17 = vadd.f32 %v2944_v34, %v685_v9  ;;  %v895_v19 = vsel %vm732_vm1, %v3205_v2, 0.0 }
 0x141   : > { %v2558_v28 = vpop.f32.mrf.mxu0  ;;  %881 = vadd.xlane.f32.xlu1 %v880_v5 }
 0x142   : > { %4167 = vst [vmem:[#allocation7_spill] sm:$0xff] %v3210_v17  ;;  %v3215_v29 = vadd.f32 %v2558_v28, %v2944_v34  ;;  %v889_v54 = vsel %vm732_vm1, %v3210_v17, 0.0 }
 0x143   : > { %v688_v40 = vpop.f32.mrf.mxu0  ;;  %896 = vadd.xlane.f32.xlu0 %v895_v19 }
 0x144   : > { %4168 = vst [vmem:[#allocation8_spill] sm:$0xff] %v3215_v29  ;;  %v3218_v49 = vadd.f32 %v2944_v34, %v688_v40  ;;  %v898_v60 = vsel %vm732_vm1, %v3215_v29, 0.0 }
 0x145   : > { %v2561_v9 = vpop.f32.mrf.mxu0  ;;  %899 = vadd.xlane.f32.xlu1 %v898_v60 }
 0x146   : > { %4169 = vst [vmem:[#allocation9_spill] sm:$0xff] %v3218_v49  ;;  %v3225_v2 = vadd.f32 %v2561_v9, %v2944_v34  ;;  %v892_v5 = vsel %vm732_vm1, %v3218_v49, 0.0 }
 0x147   : > { %v701_v28 = vpop.f32.mrf.mxu0  ;;  %890 = vadd.xlane.f32.xlu0 %v889_v54 }
 0x148   : > { %4170 = vst [vmem:[#allocation10_spill] sm:$0xff] %v3225_v2  ;;  %v3230_v19 = vadd.f32 %v2944_v34, %v701_v28  ;;  %v907_v40 = vsel %vm732_vm1, %v3225_v2, 0.0 }
 0x149   : > { %v2562_v29 = vpop.f32.mrf.mxu0  ;;  %893 = vadd.xlane.f32.xlu1 %v892_v5 }
 0x14a   : > { %4171 = vst [vmem:[#allocation11_spill] sm:$0xff] %v3230_v19  ;;  %v3235_v17 = vadd.f32 %v2562_v29, %v2944_v34  ;;  %v901_v54 = vsel %vm732_vm1, %v3230_v19, 0.0 }
 0x14b   : > { %v704_v60 = vpop.f32.mrf.mxu0  ;;  %908 = vadd.xlane.f32.xlu0 %v907_v40 }
 0x14c   : > { %4172 = vst [vmem:[#allocation12_spill] sm:$0xff] %v3235_v17  ;;  %v3238_v9 = vadd.f32 %v2944_v34, %v704_v60  ;;  %v910_v49 = vsel %vm732_vm1, %v3235_v17, 0.0 }
 0x14d   : > { %v3244_v28 = vpop.f32.mrf.mxu0  ;;  %911 = vadd.xlane.f32.xlu1 %v910_v49 }
 0x14e   : > { %4173 = vst [vmem:[#allocation13_spill] sm:$0xff] %v3238_v9  ;;  %v904_v5 = vsel %vm732_vm1, %v3238_v9, 0.0 }
 0x14f   : > { %v717_v2 = vpop.f32.mrf.mxu0  ;;  %902 = vadd.xlane.f32.xlu0 %v901_v54 }
 0x150   : > { %v3249_v29 = vadd.f32 %v2944_v34, %v717_v2 }
 0x151   : > { %v3251_v40 = vpop.f32.mrf.mxu0  ;;  %905 = vadd.xlane.f32.xlu1 %v904_v5 }
 0x152   : > { %4174 = vst [vmem:[#allocation14_spill] sm:$0xff] %v3249_v29  ;;  %v913_v60 = vsel %vm732_vm1, %v3249_v29, 0.0 }
 0x153   : > { %v720_v17 = vpop.f32.mrf.mxu0  ;;  %914 = vadd.xlane.f32.xlu0 %v913_v60 }
 0x154   : > { %v3256_v19 = vadd.f32 %v2944_v34, %v720_v17 }
 0x156   : > { %v916_v49 = vsel %vm732_vm1, %v3256_v19, 0.0 }
 0x157   : > { %917 = vadd.xlane.f32.xlu1 %v916_v49 }
 0x162   : > { %v741_v9 = vpop.xlane.xlu1 %740 }
 0x163   : > { %v928_v54 = vmul.f32 0.015625, %v741_v9 }
 0x164   : > { %v735_v42 = vpop.xlane.xlu0 %734 }
 0x165   : > { %v3261_v2 = vsub.f32 %v2947_v36, %v928_v54  ;;  %v926_v32 = vmul.f32 0.015625, %v735_v42 }
 0x166   : > { %v744_v5 = vpop.xlane.xlu1 %743 }
 0x167   : > { %v3264_v22 = vsub.f32 %v2950_v38, %v926_v32  ;;  %v929_v29 = vmul.f32 0.015625, %v744_v5  ;;  %v1056_v17 = vmul.f32 %v3261_v2, %v3261_v2 }
 0x168   : > { %v738_v60 = vpop.xlane.xlu0 %737 }
 0x169   : > { %4175 = vst [vmem:[#allocation15_spill] sm:$0xff] %v3264_v22  ;;  %v3269_v10 = vsub.f32 %v2955_v41, %v929_v29  ;;  %v927_v49 = vmul.f32 0.015625, %v738_v60  ;;  %v1124_v9 = vsel %vm732_vm1, %v1056_v17, 0.0  ;;  %v1054_v36 = vmul.f32 %v3264_v22, %v3264_v22 }
 0x16a   : > { %1125 = vadd.xlane.f32.xlu0 %v1124_v9 }
 0x16b   : > { %v3275_v42 = vsub.f32 %v2960_v44, %v927_v49  ;;  %v1057_v38 = vmul.f32 %v3269_v10, %v3269_v10  ;;  %v1118_v41 = vsel %vm732_vm1, %v1054_v36, 0.0 }
 0x16c   : > { %v753_v32 = vpop.xlane.xlu0 %752 }
 0x16d   : > { %4176 = vst [vmem:[#allocation16_spill] sm:$0xff] %v3275_v42  ;;  %v932_v54 = vmul.f32 0.015625, %v753_v32  ;;  %v1127_v5 = vsel %vm732_vm1, %v1057_v38, 0.0  ;;  %v1055_v29 = vmul.f32 %v3275_v42, %v3275_v42 }
 0x16e   : > { %v756_v17 = vpop.xlane.xlu1 %755  ;;  %1128 = vadd.xlane.f32.xlu1 %v1127_v5  ;;  %1119 = vadd.xlane.f32.xlu0 %v1118_v41 }
 0x16f   : > { %v3284_v60 = vsub.f32 %v2965_v47, %v932_v54  ;;  %v933_v44 = vmul.f32 0.015625, %v756_v17  ;;  %v1121_v32 = vsel %vm732_vm1, %v1055_v29, 0.0 }
 0x170   : > { %v747_v49 = vpop.xlane.xlu0 %746 }
 0x171   : > { %v3287_v9 = vsub.f32 %v2973_v52, %v933_v44  ;;  %v930_v22 = vmul.f32 0.015625, %v747_v49  ;;  %v1060_v36 = vmul.f32 %v3284_v60, %v3284_v60 }
 0x172   : > { %v750_v38 = vpop.xlane.xlu1 %749  ;;  %1122 = vadd.xlane.f32.xlu1 %v1121_v32 }
 0x173   : > { %v3293_v42 = vsub.f32 %v2970_v51, %v930_v22  ;;  %v931_v5 = vmul.f32 0.015625, %v750_v38  ;;  %v1136_v47 = vsel %vm732_vm1, %v1060_v36, 0.0  ;;  %v1061_v54 = vmul.f32 %v3287_v9, %v3287_v9 }
 0x174   : > { %1137 = vadd.xlane.f32.xlu0 %v1136_v47  ;;  %v765_v52 = vpop.xlane.xlu0 %764 }
 0x175   : > { %v3299_v41 = vsub.f32 %v2978_v55, %v931_v5  ;;  %v936_v29 = vmul.f32 0.015625, %v765_v52  ;;  %v1139_v17 = vsel %vm732_vm1, %v1061_v54, 0.0  ;;  %v1058_v44 = vmul.f32 %v3293_v42, %v3293_v42 }
 0x176   : > { %v768_v49 = vpop.xlane.xlu1 %767  ;;  %1140 = vadd.xlane.f32.xlu1 %v1139_v17 }
 0x177   : > { %v3305_v51 = vsub.f32 %v2983_v58, %v936_v29  ;;  %v937_v22 = vmul.f32 0.015625, %v768_v49  ;;  %v1130_v32 = vsel %vm732_vm1, %v1058_v44, 0.0  ;;  %v1059_v36 = vmul.f32 %v3299_v41, %v3299_v41 }
 0x178   : > { %1131 = vadd.xlane.f32.xlu0 %v1130_v32  ;;  %v759_v55 = vpop.xlane.xlu0 %758 }
 0x179   : > { %v3311_v38 = vsub.f32 %v2993_v0, %v937_v22  ;;  %v934_v5 = vmul.f32 0.015625, %v759_v55  ;;  %v1133_v47 = vsel %vm732_vm1, %v1059_v36, 0.0  ;;  %v1064_v54 = vmul.f32 %v3305_v51, %v3305_v51 }
 0x17a   : > { %v762_v52 = vpop.xlane.xlu1 %761  ;;  %1134 = vadd.xlane.f32.xlu1 %v1133_v47 }
 0x17b   : > { %v3317_v58 = vsub.f32 %v2990_v63, %v934_v5  ;;  %v935_v29 = vmul.f32 0.015625, %v762_v52  ;;  %v1148_v17 = vsel %vm732_vm1, %v1064_v54, 0.0  ;;  %v1065_v44 = vmul.f32 %v3311_v38, %v3311_v38 }
 0x17c   : > { %1149 = vadd.xlane.f32.xlu0 %v1148_v17  ;;  %v777_v0 = vpop.xlane.xlu0 %776 }
 0x17d   : > { %v3323_v49 = vsub.f32 %v2998_v3, %v935_v29  ;;  %v940_v22 = vmul.f32 0.015625, %v777_v0  ;;  %v1151_v32 = vsel %vm732_vm1, %v1065_v44, 0.0  ;;  %v1062_v36 = vmul.f32 %v3317_v58, %v3317_v58 }
 0x17e   : > { %v780_v55 = vpop.xlane.xlu1 %779  ;;  %1152 = vadd.xlane.f32.xlu1 %v1151_v32 }
 0x17f   : > { %v3329_v63 = vsub.f32 %v3003_v6, %v940_v22  ;;  %v941_v5 = vmul.f32 0.015625, %v780_v55  ;;  %v1142_v47 = vsel %vm732_vm1, %v1062_v36, 0.0  ;;  %v1063_v54 = vmul.f32 %v3323_v49, %v3323_v49 }
 0x180   : > { %1143 = vadd.xlane.f32.xlu0 %v1142_v47  ;;  %v771_v3 = vpop.xlane.xlu0 %770 }
 0x181   : > { %v3335_v52 = vsub.f32 %v3013_v12, %v941_v5  ;;  %v938_v29 = vmul.f32 0.015625, %v771_v3  ;;  %v1145_v17 = vsel %vm732_vm1, %v1063_v54, 0.0  ;;  %v1068_v44 = vmul.f32 %v3329_v63, %v3329_v63 }
 0x182   : > { %v774_v0 = vpop.xlane.xlu1 %773  ;;  %1146 = vadd.xlane.f32.xlu1 %v1145_v17 }
 0x183   : > { %v3341_v6 = vsub.f32 %v3010_v11, %v938_v29  ;;  %v939_v22 = vmul.f32 0.015625, %v774_v0  ;;  %v1160_v32 = vsel %vm732_vm1, %v1068_v44, 0.0  ;;  %v1069_v36 = vmul.f32 %v3335_v52, %v3335_v52  ;;  %v2649_v0 = vld [vmem:[%s4122_s3 + $0x18] sm:$0xff]  }
 0x184   : > { %1161 = vadd.xlane.f32.xlu0 %v1160_v32  ;;  %v789_v12 = vpop.xlane.xlu0 %788  ;;  %2567 = vmatprep.subr.bf16.mxu1 %v2649_v0 }
 0x185   : > { %v3347_v55 = vsub.f32 %v3018_v15, %v939_v22  ;;  %v944_v5 = vmul.f32 0.015625, %v789_v12  ;;  %v1163_v47 = vsel %vm732_vm1, %v1069_v36, 0.0  ;;  %v1066_v54 = vmul.f32 %v3341_v6, %v3341_v6  ;;  %2568 = vmatpush3.bf16.msra.mxu1 %v2649_v0 }
 0x186   : > { %v792_v3 = vpop.xlane.xlu1 %791  ;;  %1164 = vadd.xlane.f32.xlu1 %v1163_v47 }
 0x187   : > { %v3353_v11 = vsub.f32 %v3023_v18, %v944_v5  ;;  %v945_v29 = vmul.f32 0.015625, %v792_v3  ;;  %v1154_v17 = vsel %vm732_vm1, %v1066_v54, 0.0  ;;  %v1067_v44 = vmul.f32 %v3347_v55, %v3347_v55 }
 0x188   : > { %1155 = vadd.xlane.f32.xlu0 %v1154_v17  ;;  %v783_v15 = vpop.xlane.xlu0 %782 }
 0x189   : > { %v3362_v22 = vsub.f32 %v3033_v24, %v945_v29  ;;  %v942_v32 = vmul.f32 0.015625, %v783_v15  ;;  %v1157_v36 = vsel %vm732_vm1, %v1067_v44, 0.0  ;;  %v1072_v18 = vmul.f32 %v3353_v11, %v3353_v11  ;;  %v2650_v29 = vld [vmem:[%s4122_s3 + $0x10] sm:$0xff]  }
 0x18a   : > { %v786_v12 = vpop.xlane.xlu1 %785  ;;  %1158 = vadd.xlane.f32.xlu1 %v1157_v36  ;;  %2569 = vmatprep.subr.bf16.mxu1 %v2650_v29 }
 0x18b   : > { %v3368_v5 = vsub.f32 %v3030_v23, %v942_v32  ;;  %v943_v47 = vmul.f32 0.015625, %v786_v12  ;;  %v1172_v54 = vsel %vm732_vm1, %v1072_v18, 0.0  ;;  %v1073_v3 = vmul.f32 %v3362_v22, %v3362_v22  ;;  %2570 = vmatpush3.bf16.msra.mxu1 %v2650_v29 }
 0x18c   : > { %1173 = vadd.xlane.f32.xlu0 %v1172_v54  ;;  %v801_v24 = vpop.xlane.xlu0 %800 }
 0x18d   : > { %v3377_v17 = vsub.f32 %v3038_v27, %v943_v47  ;;  %v948_v44 = vmul.f32 0.015625, %v801_v24  ;;  %v1175_v23 = vsel %vm732_vm1, %v1073_v3, 0.0  ;;  %v1070_v15 = vmul.f32 %v3368_v5, %v3368_v5  ;;  %v2651_v47 = vld [vmem:[%s4122_s3 + $0x8] sm:$0xff]  }
 0x18e   : > { %v804_v32 = vpop.xlane.xlu1 %803  ;;  %1176 = vadd.xlane.f32.xlu1 %v1175_v23  ;;  %2571 = vmatprep.subr.bf16.mxu1 %v2651_v47 }
 0x18f   : > { %v3383_v0 = vsub.f32 %v3043_v30, %v948_v44  ;;  %v949_v36 = vmul.f32 0.015625, %v804_v32  ;;  %v1166_v18 = vsel %vm732_vm1, %v1070_v15, 0.0  ;;  %v1071_v12 = vmul.f32 %v3377_v17, %v3377_v17  ;;  %2572 = vmatpush3.bf16.msra.mxu1 %v2651_v47 }
 0x190   : > { %1167 = vadd.xlane.f32.xlu0 %v1166_v18  ;;  %v795_v27 = vpop.xlane.xlu0 %794  ;;  %v3414_v47 = vadd.f32 %v3244_v28, %v2944_v34 }
 0x191   : > { %v3392_v54 = vsub.f32 %v3053_v39, %v949_v36  ;;  %v946_v3 = vmul.f32 0.015625, %v795_v27  ;;  %v1169_v30 = vsel %vm732_vm1, %v1071_v12, 0.0  ;;  %v1076_v24 = vmul.f32 %v3383_v0, %v3383_v0  ;;  %v2652_v36 = vld [vmem:[%s4122_s3] sm:$0xff]  }
 0x192   : > { %v798_v44 = vpop.xlane.xlu1 %797  ;;  %1170 = vadd.xlane.f32.xlu1 %v1169_v30  ;;  %2573 = vmatprep.subr.bf16.mxu1 %v2652_v36 }
 0x193   : > { %v3398_v29 = vsub.f32 %v3050_v37, %v946_v3  ;;  %v947_v23 = vmul.f32 0.015625, %v798_v44  ;;  %v1184_v15 = vsel %vm732_vm1, %v1076_v24, 0.0  ;;  %v1077_v32 = vmul.f32 %v3392_v54, %v3392_v54  ;;  %2574 = vmatpush3.bf16.msra.mxu1 %v2652_v36 }
 0x194   : > { %1185 = vadd.xlane.f32.xlu0 %v1184_v15  ;;  %v813_v39 = vpop.xlane.xlu0 %812  ;;  %v3421_v44 = vadd.f32 %v3251_v40, %v2944_v34  ;;  %v919_v36 = vsel %vm732_vm1, %v3414_v47, 0.0 }
 0x195   : > { %v3407_v18 = vsub.f32 %v3058_v43, %v947_v23  ;;  %v1187_v12 = vsel %vm732_vm1, %v1077_v32, 0.0  ;;  %v1074_v37 = vmul.f32 %v3398_v29, %v3398_v29  ;;  %v952_v3 = vmul.f32 0.015625, %v813_v39 }
 0x196   : > { %v816_v27 = vpop.xlane.xlu1 %815  ;;  %1188 = vadd.xlane.f32.xlu1 %v1187_v12 }
 0x197   : > { %v1178_v30 = vsel %vm732_vm1, %v1074_v37, 0.0  ;;  %v1075_v24 = vmul.f32 %v3407_v18, %v3407_v18  ;;  %v953_v23 = vmul.f32 0.015625, %v816_v27  ;;  %v3425_v28 = vsub.f32 %v3063_v48, %v952_v3 }
 0x198   : > { %1179 = vadd.xlane.f32.xlu0 %v1178_v30  ;;  %v807_v43 = vpop.xlane.xlu0 %806  ;;  %v922_v27 = vsel %vm732_vm1, %v3421_v44, 0.0 }
 0x199   : > { %v950_v15 = vmul.f32 0.015625, %v807_v43  ;;  %v1181_v32 = vsel %vm732_vm1, %v1075_v24, 0.0  ;;  %v3433_v34 = vsub.f32 %v3075_v59, %v953_v23  ;;  %v1080_v59 = vmul.f32 %v3425_v28, %v3425_v28 }
 0x19a   : > { %v810_v12 = vpop.xlane.xlu1 %809  ;;  %1182 = vadd.xlane.f32.xlu1 %v1181_v32 }
 0x19b   : > { %v3428_v39 = vsub.f32 %v3068_v53, %v950_v15  ;;  %v951_v37 = vmul.f32 0.015625, %v810_v12  ;;  %v1081_v12 = vmul.f32 %v3433_v34, %v3433_v34 }
 0x19c   : > { %920 = vadd.xlane.f32.xlu0 %v919_v36  ;;  %v825_v30 = vpop.xlane.xlu0 %824 }
 0x19d   : > { %v3436_v40 = vsub.f32 %v3078_v61, %v951_v37  ;;  %v1078_v48 = vmul.f32 %v3428_v39, %v3428_v39  ;;  %v956_v3 = vmul.f32 0.015625, %v825_v30 }
 0x19e   : > { %v828_v53 = vpop.xlane.xlu1 %827  ;;  %923 = vadd.xlane.f32.xlu1 %v922_v27 }
 0x19f   : > { %v1190_v24 = vsel %vm732_vm1, %v1078_v48, 0.0  ;;  %v1079_v43 = vmul.f32 %v3436_v40, %v3436_v40  ;;  %v957_v23 = vmul.f32 0.015625, %v828_v53  ;;  %v3451_v36 = vsub.f32 %v3085_v4, %v956_v3 }
 0x1a0   : > { %1191 = vadd.xlane.f32.xlu0 %v1190_v24  ;;  %v819_v61 = vpop.xlane.xlu0 %818  ;;  %v1196_v48 = vsel %vm732_vm1, %v1080_v59, 0.0 }
 0x1a1   : > { %v954_v15 = vmul.f32 0.015625, %v819_v61  ;;  %v1193_v32 = vsel %vm732_vm1, %v1079_v43, 0.0  ;;  %v3458_v53 = vsub.f32 %v3095_v13, %v957_v23  ;;  %v1199_v61 = vsel %vm732_vm1, %v1081_v12, 0.0 }
 0x1a2   : > { %v822_v37 = vpop.xlane.xlu1 %821  ;;  %1194 = vadd.xlane.f32.xlu1 %v1193_v32  ;;  %v1084_v13 = vmul.f32 %v3451_v36, %v3451_v36 }
 0x1a3   : > { %v3454_v30 = vsub.f32 %v3090_v8, %v954_v15  ;;  %v955_v27 = vmul.f32 0.015625, %v822_v37  ;;  %v1085_v37 = vmul.f32 %v3458_v53, %v3458_v53 }
 0x1a4   : > { %1197 = vadd.xlane.f32.xlu0 %v1196_v48  ;;  %v837_v24 = vpop.xlane.xlu0 %836 }
 0x1a5   : > { %v3461_v43 = vsub.f32 %v3098_v16, %v955_v27  ;;  %v1082_v4 = vmul.f32 %v3454_v30, %v3454_v30  ;;  %v960_v8 = vmul.f32 0.015625, %v837_v24 }
 0x1a6   : > { %v840_v3 = vpop.xlane.xlu1 %839  ;;  %1200 = vadd.xlane.f32.xlu1 %v1199_v61 }
 0x1a7   : > { %v1202_v15 = vsel %vm732_vm1, %v1082_v4, 0.0  ;;  %v1083_v59 = vmul.f32 %v3461_v43, %v3461_v43  ;;  %v961_v16 = vmul.f32 0.015625, %v840_v3  ;;  %v3475_v48 = vsub.f32 %v3105_v21, %v960_v8 }
 0x1a8   : > { %1203 = vadd.xlane.f32.xlu0 %v1202_v15  ;;  %v831_v23 = vpop.xlane.xlu0 %830  ;;  %v1208_v4 = vsel %vm732_vm1, %v1084_v13, 0.0 }
 0x1a9   : > { %v958_v32 = vmul.f32 0.015625, %v831_v23  ;;  %v1205_v12 = vsel %vm732_vm1, %v1083_v59, 0.0  ;;  %v3482_v3 = vsub.f32 %v3115_v31, %v961_v16  ;;  %v1211_v23 = vsel %vm732_vm1, %v1085_v37, 0.0 }
 0x1aa   : > { %v834_v27 = vpop.xlane.xlu1 %833  ;;  %1206 = vadd.xlane.f32.xlu1 %v1205_v12  ;;  %v1088_v31 = vmul.f32 %v3475_v48, %v3475_v48 }
 0x1ab   : > { %v3478_v24 = vsub.f32 %v3110_v26, %v958_v32  ;;  %v959_v61 = vmul.f32 0.015625, %v834_v27  ;;  %v1089_v27 = vmul.f32 %v3482_v3, %v3482_v3 }
 0x1ac   : > { %1209 = vadd.xlane.f32.xlu0 %v1208_v4  ;;  %v849_v15 = vpop.xlane.xlu0 %848 }
 0x1ad   : > { %v3485_v59 = vsub.f32 %v3118_v33, %v959_v61  ;;  %v1086_v21 = vmul.f32 %v3478_v24, %v3478_v24  ;;  %v964_v26 = vmul.f32 0.015625, %v849_v15 }
 0x1ae   : > { %v852_v8 = vpop.xlane.xlu1 %851  ;;  %1212 = vadd.xlane.f32.xlu1 %v1211_v23 }
 0x1af   : > { %v1214_v32 = vsel %vm732_vm1, %v1086_v21, 0.0  ;;  %v1087_v13 = vmul.f32 %v3485_v59, %v3485_v59  ;;  %v965_v33 = vmul.f32 0.015625, %v852_v8  ;;  %v3499_v4 = vsub.f32 %v3125_v45, %v964_v26 }
 0x1b0   : > { %1215 = vadd.xlane.f32.xlu0 %v1214_v32  ;;  %v843_v16 = vpop.xlane.xlu0 %842  ;;  %v1220_v21 = vsel %vm732_vm1, %v1088_v31, 0.0 }
 0x1b1   : > { %v962_v12 = vmul.f32 0.015625, %v843_v16  ;;  %v1217_v37 = vsel %vm732_vm1, %v1087_v13, 0.0  ;;  %v3506_v8 = vsub.f32 %v3135_v57, %v965_v33  ;;  %v1223_v16 = vsel %vm732_vm1, %v1089_v27, 0.0 }
 0x1b2   : > { %v846_v61 = vpop.xlane.xlu1 %845  ;;  %1218 = vadd.xlane.f32.xlu1 %v1217_v37  ;;  %v1092_v57 = vmul.f32 %v3499_v4, %v3499_v4 }
 0x1b3   : > { %v3502_v15 = vsub.f32 %v3130_v50, %v962_v12  ;;  %v963_v23 = vmul.f32 0.015625, %v846_v61  ;;  %v1093_v61 = vmul.f32 %v3506_v8, %v3506_v8 }
 0x1b4   : > { %1221 = vadd.xlane.f32.xlu0 %v1220_v21  ;;  %v861_v32 = vpop.xlane.xlu0 %860 }
 0x1b5   : > { %v3509_v13 = vsub.f32 %v3138_v62, %v963_v23  ;;  %v1090_v45 = vmul.f32 %v3502_v15, %v3502_v15  ;;  %v968_v50 = vmul.f32 0.015625, %v861_v32 }
 0x1b6   : > { %v864_v26 = vpop.xlane.xlu1 %863  ;;  %1224 = vadd.xlane.f32.xlu1 %v1223_v16 }
 0x1b7   : > { %v1226_v12 = vsel %vm732_vm1, %v1090_v45, 0.0  ;;  %v1091_v31 = vmul.f32 %v3509_v13, %v3509_v13  ;;  %v969_v62 = vmul.f32 0.015625, %v864_v26  ;;  %v3523_v21 = vsub.f32 %v3145_v7, %v968_v50 }
 0x1b8   : > { %1227 = vadd.xlane.f32.xlu0 %v1226_v12  ;;  %v855_v33 = vpop.xlane.xlu0 %854  ;;  %v1232_v45 = vsel %vm732_vm1, %v1092_v57, 0.0 }
 0x1b9   : > { %v966_v37 = vmul.f32 0.015625, %v855_v33  ;;  %v1229_v27 = vsel %vm732_vm1, %v1091_v31, 0.0  ;;  %4177 = vst [vmem:[#allocation17_spill] sm:$0xff] %v3523_v21  ;;  %v3530_v26 = vsub.f32 %v3155_v20, %v969_v62  ;;  %v1235_v33 = vsel %vm732_vm1, %v1093_v61, 0.0 }
 0x1ba   : > { %v858_v23 = vpop.xlane.xlu1 %857  ;;  %1230 = vadd.xlane.f32.xlu1 %v1229_v27  ;;  %v1096_v20 = vmul.f32 %v3523_v21, %v3523_v21 }
 0x1bb   : > { %v3526_v32 = vsub.f32 %v3150_v14, %v966_v37  ;;  %v967_v16 = vmul.f32 0.015625, %v858_v23  ;;  %4179 = vst [vmem:[#allocation19_spill] sm:$0xff] %v3530_v26  ;;  %v1097_v23 = vmul.f32 %v3530_v26, %v3530_v26 }
 0x1bc   : > { %1233 = vadd.xlane.f32.xlu0 %v1232_v45  ;;  %v873_v12 = vpop.xlane.xlu0 %872 }
 0x1bd   : > { %4178 = vst [vmem:[#allocation18_spill] sm:$0xff] %v3526_v32  ;;  %v3533_v31 = vsub.f32 %v3158_v25, %v967_v16  ;;  %v1094_v7 = vmul.f32 %v3526_v32, %v3526_v32  ;;  %v972_v14 = vmul.f32 0.015625, %v873_v12 }
 0x1be   : > { %v876_v50 = vpop.xlane.xlu1 %875  ;;  %1236 = vadd.xlane.f32.xlu1 %v1235_v33 }
 0x1bf   : > { %4180 = vst [vmem:[#allocation20_spill] sm:$0xff] %v3533_v31  ;;  %v1238_v37 = vsel %vm732_vm1, %v1094_v7, 0.0  ;;  %v1095_v57 = vmul.f32 %v3533_v31, %v3533_v31  ;;  %v973_v25 = vmul.f32 0.015625, %v876_v50  ;;  %v3547_v45 = vsub.f32 %v3165_v35, %v972_v14 }
 0x1c0   : > { %1239 = vadd.xlane.f32.xlu0 %v1238_v37  ;;  %v867_v62 = vpop.xlane.xlu0 %866  ;;  %v1244_v7 = vsel %vm732_vm1, %v1096_v20, 0.0 }
 0x1c1   : > { %v970_v27 = vmul.f32 0.015625, %v867_v62  ;;  %v1241_v61 = vsel %vm732_vm1, %v1095_v57, 0.0  ;;  %4181 = vst [vmem:[#allocation21_spill] sm:$0xff] %v3547_v45  ;;  %v3554_v50 = vsub.f32 %v3175_v56, %v973_v25  ;;  %v1247_v62 = vsel %vm732_vm1, %v1097_v23, 0.0 }
 0x1c2   : > { %v870_v16 = vpop.xlane.xlu1 %869  ;;  %1242 = vadd.xlane.f32.xlu1 %v1241_v61  ;;  %v1100_v56 = vmul.f32 %v3547_v45, %v3547_v45 }
 0x1c3   : > { %v3550_v12 = vsub.f32 %v3170_v46, %v970_v27  ;;  %v971_v33 = vmul.f32 0.015625, %v870_v16  ;;  %4183 = vst [vmem:[#allocation23_spill] sm:$0xff] %v3554_v50  ;;  %v1101_v16 = vmul.f32 %v3554_v50, %v3554_v50 }
 0x1c4   : > { %1245 = vadd.xlane.f32.xlu0 %v1244_v7  ;;  %v885_v37 = vpop.xlane.xlu0 %884  ;;  %v4185_v7 = vld [vmem:[#allocation2_spill] sm:$0xff]  ;;  %v1256_v45 = vsel %vm732_vm1, %v1100_v56, 0.0 }
 0x1c5   : > { %4182 = vst [vmem:[#allocation22_spill] sm:$0xff] %v3550_v12  ;;  %v3557_v57 = vsub.f32 %v3178_v1, %v971_v33  ;;  %v1098_v35 = vmul.f32 %v3550_v12, %v3550_v12  ;;  %v976_v46 = vmul.f32 0.015625, %v885_v37  ;;  %v1259_v50 = vsel %vm732_vm1, %v1101_v16, 0.0 }
 0x1c6   : > { %v888_v14 = vpop.xlane.xlu1 %887  ;;  %1248 = vadd.xlane.f32.xlu1 %v1247_v62  ;;  %v4187_v62 = vld [vmem:[#allocation3_spill] sm:$0xff] }
 0x1c7   : > { %4184 = vst [vmem:[#allocation24_spill] sm:$0xff] %v3557_v57  ;;  %v1250_v27 = vsel %vm732_vm1, %v1098_v35, 0.0  ;;  %v1099_v20 = vmul.f32 %v3557_v57, %v3557_v57  ;;  %v977_v1 = vmul.f32 0.015625, %v888_v14  ;;  %v3571_v37 = vsub.f32 %v4185_v7, %v976_v46  ;;  %v4189_v14 = vld [vmem:[#allocation4_spill] sm:$0xff] }
 0x1c8   : > { %1251 = vadd.xlane.f32.xlu0 %v1250_v27  ;;  %v879_v25 = vpop.xlane.xlu0 %878 }
 0x1c9   : > { %v974_v61 = vmul.f32 0.015625, %v879_v25  ;;  %v1253_v23 = vsel %vm732_vm1, %v1099_v20, 0.0  ;;  %4186 = vst [vmem:[#allocation2_spill] sm:$0xff] %v3571_v37  ;;  %v3578_v25 = vsub.f32 %v4189_v14, %v977_v1  ;;  %v4191_v20 = vld [vmem:[#allocation5_spill] sm:$0xff]  ;;  %v1104_v56 = vmul.f32 %v3571_v37, %v3571_v37 }
 0x1ca   : > { %v882_v33 = vpop.xlane.xlu1 %881  ;;  %1254 = vadd.xlane.f32.xlu1 %v1253_v23 }
 0x1cb   : > { %v3574_v35 = vsub.f32 %v4187_v62, %v974_v61  ;;  %v975_v57 = vmul.f32 0.015625, %v882_v33  ;;  %4190 = vst [vmem:[#allocation4_spill] sm:$0xff] %v3578_v25  ;;  %v1105_v62 = vmul.f32 %v3578_v25, %v3578_v25  ;;  %v1268_v37 = vsel %vm732_vm1, %v1104_v56, 0.0 }
 0x1cc   : > { %1257 = vadd.xlane.f32.xlu0 %v1256_v45  ;;  %v897_v27 = vpop.xlane.xlu0 %896 }
 0x1cd   : > { %4188 = vst [vmem:[#allocation3_spill] sm:$0xff] %v3574_v35  ;;  %v3581_v12 = vsub.f32 %v4191_v20, %v975_v57  ;;  %v1102_v46 = vmul.f32 %v3574_v35, %v3574_v35  ;;  %v980_v61 = vmul.f32 0.015625, %v897_v27  ;;  %v4195_v20 = vld [vmem:[#allocation7_spill] sm:$0xff]  ;;  %v1271_v25 = vsel %vm732_vm1, %v1105_v62, 0.0 }
 0x1ce   : > { %v900_v23 = vpop.xlane.xlu1 %899  ;;  %1260 = vadd.xlane.f32.xlu1 %v1259_v50  ;;  %v4193_v50 = vld [vmem:[#allocation6_spill] sm:$0xff] }
 0x1cf   : > { %4192 = vst [vmem:[#allocation5_spill] sm:$0xff] %v3581_v12  ;;  %v1262_v33 = vsel %vm732_vm1, %v1102_v46, 0.0  ;;  %v1103_v45 = vmul.f32 %v3581_v12, %v3581_v12  ;;  %v981_v1 = vmul.f32 0.015625, %v900_v23  ;;  %v3595_v27 = vsub.f32 %v4193_v50, %v980_v61  ;;  %v4197_v23 = vld [vmem:[#allocation8_spill] sm:$0xff] }
 0x1d0   : > { %1263 = vadd.xlane.f32.xlu0 %v1262_v33  ;;  %v891_v57 = vpop.xlane.xlu0 %890 }
 0x1d1   : > { %v978_v7 = vmul.f32 0.015625, %v891_v57  ;;  %v1265_v16 = vsel %vm732_vm1, %v1103_v45, 0.0  ;;  %4194 = vst [vmem:[#allocation6_spill] sm:$0xff] %v3595_v27  ;;  %v3602_v33 = vsub.f32 %v4197_v23, %v981_v1  ;;  %v4199_v45 = vld [vmem:[#allocation9_spill] sm:$0xff] }
 0x1d2   : > { %v894_v14 = vpop.xlane.xlu1 %893  ;;  %1266 = vadd.xlane.f32.xlu1 %v1265_v16 }
 0x1d3   : > { %v3598_v46 = vsub.f32 %v4195_v20, %v978_v7  ;;  %v979_v12 = vmul.f32 0.015625, %v894_v14  ;;  %4198 = vst [vmem:[#allocation8_spill] sm:$0xff] %v3602_v33 }
 0x1d4   : > { %1269 = vadd.xlane.f32.xlu0 %v1268_v37  ;;  %v909_v57 = vpop.xlane.xlu0 %908  ;;  %v1108_v37 = vmul.f32 %v3595_v27, %v3595_v27 }
 0x1d5   : > { %4196 = vst [vmem:[#allocation7_spill] sm:$0xff] %v3598_v46  ;;  %v3605_v35 = vsub.f32 %v4199_v45, %v979_v12  ;;  %v1106_v61 = vmul.f32 %v3598_v46, %v3598_v46  ;;  %v984_v7 = vmul.f32 0.015625, %v909_v57  ;;  %v1109_v12 = vmul.f32 %v3602_v33, %v3602_v33  ;;  %v4203_v45 = vld [vmem:[#allocation11_spill] sm:$0xff]  ;;  %v4205_v33 = vld [vmem:[#allocation12_spill] sm:$0xff] }
 0x1d6   : > { %v912_v16 = vpop.xlane.xlu1 %911  ;;  %1272 = vadd.xlane.f32.xlu1 %v1271_v25  ;;  %v4201_v25 = vld [vmem:[#allocation10_spill] sm:$0xff]  ;;  %v1280_v27 = vsel %vm732_vm1, %v1108_v37, 0.0 }
 0x1d7   : > { %4200 = vst [vmem:[#allocation9_spill] sm:$0xff] %v3605_v35  ;;  %v1274_v14 = vsel %vm732_vm1, %v1106_v61, 0.0  ;;  %v1107_v56 = vmul.f32 %v3605_v35, %v3605_v35  ;;  %v985_v62 = vmul.f32 0.015625, %v912_v16  ;;  %v3619_v57 = vsub.f32 %v4201_v25, %v984_v7 }
 0x1d8   : > { %1275 = vadd.xlane.f32.xlu0 %v1274_v14  ;;  %v903_v1 = vpop.xlane.xlu0 %902  ;;  %v1283_v46 = vsel %vm732_vm1, %v1109_v12, 0.0 }
 0x1d9   : > { %v982_v50 = vmul.f32 0.015625, %v903_v1  ;;  %v1277_v20 = vsel %vm732_vm1, %v1107_v56, 0.0  ;;  %4202 = vst [vmem:[#allocation10_spill] sm:$0xff] %v3619_v57  ;;  %v3627_v16 = vsub.f32 %v4205_v33, %v985_v62  ;;  %v4207_v1 = vld [vmem:[#allocation13_spill] sm:$0xff]  ;;  %v1112_v33 = vmul.f32 %v3619_v57, %v3619_v57 }
 0x1da   : > { %v906_v23 = vpop.xlane.xlu1 %905  ;;  %1278 = vadd.xlane.f32.xlu1 %v1277_v20 }
 0x1db   : > { %v3622_v61 = vsub.f32 %v4203_v45, %v982_v50  ;;  %v983_v35 = vmul.f32 0.015625, %v906_v23  ;;  %4206 = vst [vmem:[#allocation12_spill] sm:$0xff] %v3627_v16  ;;  %v4209_v50 = vld [vmem:[#allocation14_spill] sm:$0xff]  ;;  %v1113_v23 = vmul.f32 %v3627_v16, %v3627_v16  ;;  %v1292_v45 = vsel %vm732_vm1, %v1112_v33, 0.0 }
 0x1dc   : > { %1281 = vadd.xlane.f32.xlu0 %v1280_v27  ;;  %v915_v14 = vpop.xlane.xlu0 %914 }
 0x1dd   : > { %4204 = vst [vmem:[#allocation11_spill] sm:$0xff] %v3622_v61  ;;  %v3630_v56 = vsub.f32 %v4207_v1, %v983_v35  ;;  %v986_v20 = vmul.f32 0.015625, %v915_v14  ;;  %v1110_v7 = vmul.f32 %v3622_v61, %v3622_v61  ;;  %v1295_v1 = vsel %vm732_vm1, %v1113_v23, 0.0 }
 0x1de   : > { %1284 = vadd.xlane.f32.xlu1 %v1283_v46 }
 0x1df   : > { %4208 = vst [vmem:[#allocation13_spill] sm:$0xff] %v3630_v56  ;;  %v3635_v25 = vsub.f32 %v4209_v50, %v986_v20  ;;  %v1286_v37 = vsel %vm732_vm1, %v1110_v7, 0.0  ;;  %v1111_v27 = vmul.f32 %v3630_v56, %v3630_v56 }
 0x1e0   : > { %v918_v12 = vpop.xlane.xlu1 %917  ;;  %1287 = vadd.xlane.f32.xlu0 %v1286_v37 }
 0x1e1   : > { %4210 = vst [vmem:[#allocation14_spill] sm:$0xff] %v3635_v25  ;;  %v987_v35 = vmul.f32 0.015625, %v918_v12  ;;  %v1289_v62 = vsel %vm732_vm1, %v1111_v27, 0.0  ;;  %v1114_v14 = vmul.f32 %v3635_v25, %v3635_v25 }
 0x1e2   : > { %1290 = vadd.xlane.f32.xlu1 %v1289_v62 }
 0x1e3   : > { %v3646_v46 = vsub.f32 %v3256_v19, %v987_v35  ;;  %v1298_v7 = vsel %vm732_vm1, %v1114_v14, 0.0 }
 0x1e4   : > { %1293 = vadd.xlane.f32.xlu0 %v1292_v45 }
 0x1e5   : > { %4211 = vst [vmem:[#allocation25_spill] sm:$0xff] %v3646_v46  ;;  %v1115_v20 = vmul.f32 %v3646_v46, %v3646_v46 }
 0x1e6   : > { %1296 = vadd.xlane.f32.xlu1 %v1295_v1 }
 0x1e7   : > { %v1301_v50 = vsel %vm732_vm1, %v1115_v20, 0.0 }
 0x1e8   : > { %1299 = vadd.xlane.f32.xlu0 %v1298_v7 }
 0x1ea   : > { %1302 = vadd.xlane.f32.xlu1 %v1301_v50 }
 0x1f3   : > { %v1126_v19 = vpop.xlane.xlu0 %1125 }
 0x1f4   : > { %v1312_v37 = vmul.f32 0.015625, %v1126_v19 }
 0x1f6   : > { %v1376_v27 = vadd.f32 1e-05, %v1312_v37 }
 0x1f7   : > { %v1129_v33 = vpop.xlane.xlu1 %1128  ;;  %v1120_v12 = vpop.xlane.xlu0 %1119 }
 0x1f8   : > { %2653 = vrsqrt.f32 %v1376_v27  ;;  %v1313_v35 = vmul.f32 0.015625, %v1129_v33  ;;  %v1310_v62 = vmul.f32 0.015625, %v1120_v12 }
 0x1fa   : > { %v1377_v45 = vadd.f32 1e-05, %v1313_v35  ;;  %v1374_v23 = vadd.f32 1e-05, %v1310_v62 }
 0x1fb   : > { %v1123_v25 = vpop.xlane.xlu1 %1122 }
 0x1fc   : > { %2655 = vrsqrt.f32 %v1377_v45  ;;  %v1311_v46 = vmul.f32 0.015625, %v1123_v25 }
 0x1fd   : > { %2657 = vrsqrt.f32 %v1374_v23  ;;  %v1138_v1 = vpop.xlane.xlu0 %1137 }
 0x1fe   : > { %v1375_v14 = vadd.f32 1e-05, %v1311_v46  ;;  %v1316_v7 = vmul.f32 0.015625, %v1138_v1 }
 0x1ff   : > { %v1141_v16 = vpop.xlane.xlu1 %1140 }
 0x200   : > { %2659 = vrsqrt.f32 %v1375_v14  ;;  %v1380_v20 = vadd.f32 1e-05, %v1316_v7  ;;  %v1317_v50 = vmul.f32 0.015625, %v1141_v16  ;;  %v3660_v16 = vld [vmem:[%s4121_s2 + $0x1] ss:$0 sm:$0xff] }
 0x201   : > { %v1132_v19 = vpop.xlane.xlu0 %1131 }
 0x202   : > { %2661 = vrsqrt.f32 %v1380_v20  ;;  %v1381_v37 = vadd.f32 1e-05, %v1317_v50  ;;  %v1314_v57 = vmul.f32 0.015625, %v1132_v19 }
 0x203   : > { %v1135_v27 = vpop.xlane.xlu1 %1134 }
 0x204   : > { %2663 = vrsqrt.f32 %v1381_v37  ;;  %v1378_v33 = vadd.f32 1e-05, %v1314_v57  ;;  %v1315_v12 = vmul.f32 0.015625, %v1135_v27 }
 0x205   : > { %v2654_v35 = vpop.eup %2653  ;;  %v1150_v62 = vpop.xlane.xlu0 %1149 }
 0x206   : > { %2665 = vrsqrt.f32 %v1378_v33  ;;  %v1379_v25 = vadd.f32 1e-05, %v1315_v12  ;;  %v1320_v45 = vmul.f32 0.015625, %v1150_v62  ;;  %v1504_v46 = vmul.f32 %v2654_v35, %v3261_v2  ;;  %v4212_v33 = vld [vmem:[#allocation15_spill] sm:$0xff] }
 0x207   : > { %v1153_v23 = vpop.xlane.xlu1 %1152 }
 0x208   : > { %2667 = vrsqrt.f32 %v1379_v25  ;;  %v1384_v1 = vadd.f32 1e-05, %v1320_v45  ;;  %v1321_v14 = vmul.f32 0.015625, %v1153_v23  ;;  %v1573_v2 = vmul.f32 %v3660_v16, %v1504_v46  ;;  %v3668_v25 = vld [vmem:[%s4121_s2 + $0x2] ss:$0 sm:$0xff] }
 0x209   : > { %v2656_v7 = vpop.eup %2655  ;;  %v1144_v20 = vpop.xlane.xlu0 %1143 }
 0x20a   : > { %v2658_v57 = vpop.eup %2657  ;;  %2669 = vrsqrt.f32 %v1384_v1  ;;  %v1385_v50 = vadd.f32 1e-05, %v1321_v14  ;;  %v1318_v19 = vmul.f32 0.015625, %v1144_v20  ;;  %v1505_v37 = vmul.f32 %v2656_v7, %v3269_v10  ;;  %v4213_v20 = vld [vmem:[#allocation16_spill] sm:$0xff] }
 0x20b   : > { %v1147_v27 = vpop.xlane.xlu1 %1146  ;;  %v1502_v12 = vmul.f32 %v2658_v57, %v4212_v33 }
 0x20c   : > { %2671 = vrsqrt.f32 %v1385_v50  ;;  %v1382_v35 = vadd.f32 1e-05, %v1318_v19  ;;  %v1319_v62 = vmul.f32 0.015625, %v1147_v27  ;;  %v1574_v45 = vmul.f32 %v3660_v16, %v1505_v37 }
 0x20d   : > { %v2660_v23 = vpop.eup %2659  ;;  %v1162_v1 = vpop.xlane.xlu0 %1161  ;;  %v1571_v14 = vmul.f32 %v3660_v16, %v1502_v12  ;;  %v1642_v27 = vadd.f32 %v3668_v25, %v1573_v2 }
 0x20e   : > { %2673 = vrsqrt.f32 %v1382_v35  ;;  %v1383_v10 = vadd.f32 1e-05, %v1319_v62  ;;  %v1324_v7 = vmul.f32 0.015625, %v1162_v1  ;;  %v1503_v57 = vmul.f32 %v2660_v23, %v4213_v20 }
 0x20f   : > { %v2662_v46 = vpop.eup %2661  ;;  %v1165_v50 = vpop.xlane.xlu1 %1164  ;;  %v1640_v19 = vadd.f32 %v3668_v25, %v1571_v14  ;;  %v1643_v33 = vadd.f32 %v3668_v25, %v1574_v45  ;;  %v1706_v31 = vmax.f32 %v1642_v27, 0.0 }
 0x210   : > { %2675 = vrsqrt.f32 %v1383_v10  ;;  %v1388_v56 = vadd.f32 1e-05, %v1324_v7  ;;  %v1325_v37 = vmul.f32 0.015625, %v1165_v50  ;;  %v1572_v61 = vmul.f32 %v3660_v16, %v1503_v57 }
 0x211   : > { %v2664_v26 = vpop.eup %2663  ;;  %v1156_v12 = vpop.xlane.xlu0 %1155  ;;  %v1707_v35 = vmax.f32 %v1643_v33, 0.0  ;;  %v1508_v62 = vmul.f32 %v2662_v46, %v3284_v60  ;;  %v1704_v2 = vmax.f32 %v1640_v19, 0.0 }
 0x212   : > { %2677 = vrsqrt.f32 %v1388_v56  ;;  %v1389_v23 = vadd.f32 1e-05, %v1325_v37  ;;  %v1322_v1 = vmul.f32 0.015625, %v1156_v12  ;;  %v1641_v20 = vadd.f32 %v3668_v25, %v1572_v61 }
 0x213   : > { %v2666_v14 = vpop.eup %2665  ;;  %v1159_v21 = vpop.xlane.xlu1 %1158  ;;  %v1509_v45 = vmul.f32 %v2664_v26, %v3287_v9  ;;  %v1577_v10 = vmul.f32 %v3660_v16, %v1508_v62  ;;  %v1769_v60 = vpack.c.bf16 %v1707_v35, %v1706_v31 }
 0x214   : > { %2679 = vrsqrt.f32 %v1389_v23  ;;  %v1386_v7 = vadd.f32 1e-05, %v1322_v1  ;;  %v1323_v57 = vmul.f32 0.015625, %v1159_v21  ;;  %v1705_v50 = vmax.f32 %v1641_v20, 0.0 }
 0x215   : > { %v2668_v33 = vpop.eup %2667  ;;  %v1174_v32 = vpop.xlane.xlu0 %1173  ;;  %v1506_v56 = vmul.f32 %v2666_v14, %v3293_v42  ;;  %v1578_v46 = vmul.f32 %v3660_v16, %v1509_v45  ;;  %v1646_v21 = vadd.f32 %v3668_v25, %v1577_v10 }
 0x216   : > { %2681 = vrsqrt.f32 %v1386_v7  ;;  %v1387_v61 = vadd.f32 1e-05, %v1323_v57  ;;  %v1328_v37 = vmul.f32 0.015625, %v1174_v32  ;;  %v1768_v19 = vpack.c.bf16 %v1705_v50, %v1704_v2 }
 0x217   : > { %v2670_v27 = vpop.eup %2669  ;;  %v1177_v12 = vpop.xlane.xlu1 %1176  ;;  %v1507_v9 = vmul.f32 %v2668_v33, %v3299_v41  ;;  %v1575_v26 = vmul.f32 %v3660_v16, %v1506_v56  ;;  %v1647_v62 = vadd.f32 %v3668_v25, %v1578_v46  ;;  %v1710_v57 = vmax.f32 %v1646_v21, 0.0 }
 0x218   : > { %2683 = vrsqrt.f32 %v1387_v61  ;;  %v1392_v31 = vadd.f32 1e-05, %v1328_v37  ;;  %v1329_v35 = vmul.f32 0.015625, %v1177_v12  ;;  %2575 = vmatprep.mubr.msk.bf16.mxu1 %vm732_vm1, %v1768_v19  ;;  %v1512_v41 = vmul.f32 %v2670_v27, %v3305_v51 }
 0x219   : > { %v2672_v42 = vpop.eup %2671  ;;  %2576 = vmatmul.mubr.msk.bf16.vlgmr.msra.gmra.mxu1 %vm732_vm1, %v1769_v60  ;;  %v1168_v32 = vpop.xlane.xlu0 %1167  ;;  %v1576_v23 = vmul.f32 %v3660_v16, %v1507_v9  ;;  %v1644_v1 = vadd.f32 %v3668_v25, %v1575_v26  ;;  %v1711_v50 = vmax.f32 %v1647_v62, 0.0 }
 0x21a   : > { %2685 = vrsqrt.f32 %v1392_v31  ;;  %v1393_v20 = vadd.f32 1e-05, %v1329_v35  ;;  %v1326_v14 = vmul.f32 0.015625, %v1168_v32  ;;  %v1513_v2 = vmul.f32 %v2672_v42, %v3311_v38 }
 0x21b   : > { %v2674_v45 = vpop.eup %2673  ;;  %v1171_v10 = vpop.xlane.xlu1 %1170  ;;  %v1645_v7 = vadd.f32 %v3668_v25, %v1576_v23  ;;  %v1708_v37 = vmax.f32 %v1644_v1, 0.0  ;;  %v1581_v19 = vmul.f32 %v3660_v16, %v1512_v41  ;;  %v1771_v31 = vpack.c.bf16 %v1711_v50, %v1710_v57 }
 0x21c   : > { %2687 = vrsqrt.f32 %v1393_v20  ;;  %v1390_v33 = vadd.f32 1e-05, %v1326_v14  ;;  %v1327_v60 = vmul.f32 0.015625, %v1171_v10  ;;  %v1510_v56 = vmul.f32 %v2674_v45, %v3317_v58 }
 0x21d   : > { %v2676_v46 = vpop.eup %2675  ;;  %v1186_v61 = vpop.xlane.xlu0 %1185  ;;  %v1709_v51 = vmax.f32 %v1645_v7, 0.0  ;;  %v1582_v27 = vmul.f32 %v3660_v16, %v1513_v2 }
 0x21e   : > { %2689 = vrsqrt.f32 %v1390_v33  ;;  %v1391_v38 = vadd.f32 1e-05, %v1327_v60  ;;  %v1332_v12 = vmul.f32 0.015625, %v1186_v61  ;;  %v1511_v9 = vmul.f32 %v2676_v46, %v3323_v49 }
 0x21f   : > { %v2678_v26 = vpop.eup %2677  ;;  %v1189_v21 = vpop.xlane.xlu1 %1188  ;;  %v1770_v62 = vpack.c.bf16 %v1709_v51, %v1708_v37  ;;  %v1579_v35 = vmul.f32 %v3660_v16, %v1510_v56  ;;  %v1651_v58 = vadd.f32 %v3668_v25, %v1582_v27  ;;  %v1650_v49 = vadd.f32 %v3668_v25, %v1581_v19 }
 0x220   : > { %2691 = vrsqrt.f32 %v1391_v38  ;;  %v1396_v42 = vadd.f32 1e-05, %v1332_v12  ;;  %v1333_v32 = vmul.f32 0.015625, %v1189_v21  ;;  %v1580_v23 = vmul.f32 %v3660_v16, %v1511_v9 }
 0x221   : > { %v2680_v1 = vpop.eup %2679  ;;  %2579 = vmatprep.mubr.msk.bf16.mxu1 %vm732_vm1, %v1770_v62  ;;  %v1180_v41 = vpop.xlane.xlu0 %1179  ;;  %v1648_v20 = vadd.f32 %v3668_v25, %v1579_v35  ;;  %v1516_v14 = vmul.f32 %v2678_v26, %v3329_v63  ;;  %v1715_v33 = vmax.f32 %v1651_v58, 0.0  ;;  %v1714_v19 = vmax.f32 %v1650_v49, 0.0 }
 0x222   : > { %2693 = vrsqrt.f32 %v1396_v42  ;;  %v1397_v2 = vadd.f32 1e-05, %v1333_v32  ;;  %2580 = vmatmul.mubr.msk.bf16.gmra.mxu1 %vm732_vm1, %v1771_v31  ;;  %v1330_v45 = vmul.f32 0.015625, %v1180_v41  ;;  %v1649_v10 = vadd.f32 %v3668_v25, %v1580_v23 }
 0x223   : > { %v2682_v7 = vpop.eup %2681  ;;  %v1183_v57 = vpop.xlane.xlu1 %1182  ;;  %v1712_v50 = vmax.f32 %v1648_v20, 0.0  ;;  %v1517_v60 = vmul.f32 %v2680_v1, %v3335_v52  ;;  %v1585_v56 = vmul.f32 %v3660_v16, %v1516_v14  ;;  %v1773_v31 = vpack.c.bf16 %v1715_v33, %v1714_v19 }
 0x224   : > { %2695 = vrsqrt.f32 %v1397_v2  ;;  %v1394_v46 = vadd.f32 1e-05, %v1330_v45  ;;  %v1331_v61 = vmul.f32 0.015625, %v1183_v57  ;;  %v1713_v37 = vmax.f32 %v1649_v10, 0.0 }
 0x225   : > { %v2684_v63 = vpop.eup %2683  ;;  %v921_v51 = vpop.xlane.xlu0 %920  ;;  %v1514_v27 = vmul.f32 %v2682_v7, %v3341_v6  ;;  %v1586_v38 = vmul.f32 %v3660_v16, %v1517_v60  ;;  %v1654_v12 = vadd.f32 %v3668_v25, %v1585_v56 }
 0x226   : > { %2697 = vrsqrt.f32 %v1394_v46  ;;  %v1395_v9 = vadd.f32 1e-05, %v1331_v61  ;;  %v988_v26 = vmul.f32 0.015625, %v921_v51  ;;  %v1772_v21 = vpack.c.bf16 %v1713_v37, %v1712_v50 }
 0x227   : > { %v2686_v52 = vpop.eup %2685  ;;  %v924_v62 = vpop.xlane.xlu1 %923  ;;  %v1515_v35 = vmul.f32 %v2684_v63, %v3347_v55  ;;  %v1583_v58 = vmul.f32 %v3660_v16, %v1514_v27  ;;  %v1655_v42 = vadd.f32 %v3668_v25, %v1586_v38  ;;  %v1718_v55 = vmax.f32 %v1654_v12, 0.0 }
 0x228   : > { %2699 = vrsqrt.f32 %v1395_v9  ;;  %v3716_v6 = vsub.f32 %v3414_v47, %v988_v26  ;;  %v989_v32 = vmul.f32 0.015625, %v924_v62  ;;  %2583 = vmatprep.mubr.msk.bf16.mxu1 %vm732_vm1, %v1772_v21  ;;  %v1520_v23 = vmul.f32 %v2686_v52, %v3353_v11 }
 0x229   : > { %v2688_v1 = vpop.eup %2687  ;;  %v1192_v41 = vpop.xlane.xlu0 %1191  ;;  %v1584_v20 = vmul.f32 %v3660_v16, %v1515_v35  ;;  %v1652_v49 = vadd.f32 %v3668_v25, %v1583_v58  ;;  %v1719_v50 = vmax.f32 %v1655_v42, 0.0 }
 0x22a   : > { %v3723_v14 = vsub.f32 %v3421_v44, %v989_v32  ;;  %2584 = vmatmul.mubr.msk.bf16.gmra.mxu1 %vm732_vm1, %v1773_v31  ;;  %v1334_v2 = vmul.f32 0.015625, %v1192_v41  ;;  %v1116_v47 = vmul.f32 %v3716_v6, %v3716_v6  ;;  %v1521_v45 = vmul.f32 %v2688_v1, %v3362_v22 }
 0x22b   : > { %v2690_v10 = vpop.eup %2689  ;;  %v1195_v11 = vpop.xlane.xlu1 %1194  ;;  %v1653_v7 = vadd.f32 %v3668_v25, %v1584_v20  ;;  %v1716_v57 = vmax.f32 %v1652_v49, 0.0  ;;  %v1589_v33 = vmul.f32 %v3660_v16, %v1520_v23  ;;  %v1775_v58 = vpack.c.bf16 %v1719_v50, %v1718_v55 }
 0x22c   : > { %v1398_v60 = vadd.f32 1e-05, %v1334_v2  ;;  %v1335_v56 = vmul.f32 0.015625, %v1195_v11  ;;  %v1304_v44 = vsel %vm732_vm1, %v1116_v47, 0.0  ;;  %v1117_v46 = vmul.f32 %v3723_v14, %v3723_v14 }
 0x22d   : > { %v2692_v61 = vpop.eup %2691  ;;  %1305 = vadd.xlane.f32.xlu0 %v1304_v44  ;;  %v1198_v37 = vpop.xlane.xlu0 %1197  ;;  %v1717_v63 = vmax.f32 %v1653_v7, 0.0  ;;  %v1518_v22 = vmul.f32 %v2690_v10, %v3368_v5  ;;  %v1590_v51 = vmul.f32 %v3660_v16, %v1521_v45  ;;  %v1658_v19 = vadd.f32 %v3668_v25, %v1589_v33 }
 0x22e   : > { %2701 = vrsqrt.f32 %v1398_v60  ;;  %v1399_v27 = vadd.f32 1e-05, %v1335_v56  ;;  %v1336_v38 = vmul.f32 0.015625, %v1198_v37  ;;  %v1307_v12 = vsel %vm732_vm1, %v1117_v46, 0.0 }
 0x22f   : > { %v2694_v9 = vpop.eup %2693  ;;  %1308 = vadd.xlane.f32.xlu1 %v1307_v12  ;;  %v1201_v26 = vpop.xlane.xlu1 %1200  ;;  %v1774_v21 = vpack.c.bf16 %v1717_v63, %v1716_v57  ;;  %v1519_v52 = vmul.f32 %v2692_v61, %v3377_v17  ;;  %v1587_v62 = vmul.f32 %v3660_v16, %v1518_v22  ;;  %v1659_v31 = vadd.f32 %v3668_v25, %v1590_v51 }
 0x230   : > { %2703 = vrsqrt.f32 %v1399_v27  ;;  %v1400_v5 = vadd.f32 1e-05, %v1336_v38  ;;  %v1337_v35 = vmul.f32 0.015625, %v1201_v26  ;;  %v1524_v41 = vmul.f32 %v2694_v9, %v3383_v0 }
 0x231   : > { %v2696_v42 = vpop.eup %2695  ;;  %2587 = vmatprep.mubr.msk.bf16.mxu1 %vm732_vm1, %v1774_v21  ;;  %v1204_v32 = vpop.xlane.xlu0 %1203  ;;  %v1588_v23 = vmul.f32 %v3660_v16, %v1519_v52  ;;  %v1656_v1 = vadd.f32 %v3668_v25, %v1587_v62  ;;  %v1722_v45 = vmax.f32 %v1658_v19, 0.0  ;;  %v1723_v10 = vmax.f32 %v1659_v31, 0.0 }
 0x232   : > { %2705 = vrsqrt.f32 %v1400_v5  ;;  %v1401_v17 = vadd.f32 1e-05, %v1337_v35  ;;  %2588 = vmatmul.mubr.msk.bf16.gmra.mxu1 %vm732_vm1, %v1775_v58  ;;  %v1338_v20 = vmul.f32 0.015625, %v1204_v32  ;;  %v1525_v49 = vmul.f32 %v2696_v42, %v3392_v54 }
 0x233   : > { %v2698_v2 = vpop.eup %2697  ;;  %v1207_v47 = vpop.xlane.xlu1 %1206  ;;  %v1657_v55 = vadd.f32 %v3668_v25, %v1588_v23  ;;  %v1720_v33 = vmax.f32 %v1656_v1, 0.0  ;;  %v1593_v56 = vmul.f32 %v3660_v16, %v1524_v41  ;;  %v1777_v22 = vpack.c.bf16 %v1723_v10, %v1722_v45 }
 0x234   : > { %2707 = vrsqrt.f32 %v1401_v17  ;;  %v1402_v11 = vadd.f32 1e-05, %v1338_v20  ;;  %v1339_v7 = vmul.f32 0.015625, %v1207_v47  ;;  %v1522_v57 = vmul.f32 %v2698_v2, %v3398_v29 }
 0x235   : > { %v2700_v50 = vpop.eup %2699  ;;  %v1210_v0 = vpop.xlane.xlu0 %1209  ;;  %v1721_v60 = vmax.f32 %v1657_v55, 0.0  ;;  %v1594_v44 = vmul.f32 %v3660_v16, %v1525_v49  ;;  %v1662_v26 = vadd.f32 %v3668_v25, %v1593_v56 }
 0x236   : > { %2709 = vrsqrt.f32 %v1402_v11  ;;  %v1403_v54 = vadd.f32 1e-05, %v1339_v7  ;;  %v1340_v46 = vmul.f32 0.015625, %v1210_v0  ;;  %v1523_v61 = vmul.f32 %v2700_v50, %v3407_v18 }
 0x237   : > { %v1213_v37 = vpop.xlane.xlu1 %1212  ;;  %v1776_v63 = vpack.c.bf16 %v1721_v60, %v1720_v33  ;;  %v1591_v51 = vmul.f32 %v3660_v16, %v1522_v57  ;;  %v1663_v29 = vadd.f32 %v3668_v25, %v1594_v44  ;;  %v1726_v41 = vmax.f32 %v1662_v26, 0.0 }
 0x238   : > { %2711 = vrsqrt.f32 %v1403_v54  ;;  %v1404_v19 = vadd.f32 1e-05, %v1340_v46  ;;  %v1341_v27 = vmul.f32 0.015625, %v1213_v37  ;;  %v1592_v38 = vmul.f32 %v3660_v16, %v1523_v61 }
 0x239   : > { %2591 = vmatprep.mubr.msk.bf16.mxu1 %vm732_vm1, %v1776_v63  ;;  %v1216_v12 = vpop.xlane.xlu0 %1215  ;;  %v1660_v9 = vadd.f32 %v3668_v25, %v1591_v51  ;;  %v1727_v35 = vmax.f32 %v1663_v29, 0.0 }
 0x23a   : > { %2713 = vrsqrt.f32 %v1404_v19  ;;  %v1405_v18 = vadd.f32 1e-05, %v1341_v27  ;;  %2592 = vmatmul.mubr.msk.bf16.gmra.mxu1 %vm732_vm1, %v1777_v22  ;;  %v1342_v21 = vmul.f32 0.015625, %v1216_v12  ;;  %v1661_v52 = vadd.f32 %v3668_v25, %v1592_v38 }
 0x23b   : > { %v2702_v62 = vpop.eup %2701  ;;  %v1219_v31 = vpop.xlane.xlu1 %1218  ;;  %v1724_v5 = vmax.f32 %v1660_v9, 0.0  ;;  %v1779_v45 = vpack.c.bf16 %v1727_v35, %v1726_v41 }
 0x23c   : > { %2715 = vrsqrt.f32 %v1405_v18  ;;  %v1406_v58 = vadd.f32 1e-05, %v1342_v21  ;;  %v1343_v42 = vmul.f32 0.015625, %v1219_v31  ;;  %v1725_v32 = vmax.f32 %v1661_v52, 0.0 }
 0x23d   : > { %v2704_v23 = vpop.eup %2703  ;;  %v1222_v1 = vpop.xlane.xlu0 %1221  ;;  %v1526_v17 = vmul.f32 %v2702_v62, %v3428_v39 }
 0x23e   : > { %2717 = vrsqrt.f32 %v1406_v58  ;;  %v1407_v20 = vadd.f32 1e-05, %v1343_v42  ;;  %v1344_v49 = vmul.f32 0.015625, %v1222_v1  ;;  %v1778_v2 = vpack.c.bf16 %v1725_v32, %v1724_v5 }
 0x23f   : > { %v2706_v47 = vpop.eup %2705  ;;  %v1225_v55 = vpop.xlane.xlu1 %1224  ;;  %v1527_v10 = vmul.f32 %v2704_v23, %v3436_v40  ;;  %v1595_v11 = vmul.f32 %v3660_v16, %v1526_v17 }
 0x240   : > { %2719 = vrsqrt.f32 %v1407_v20  ;;  %v1408_v7 = vadd.f32 1e-05, %v1344_v49  ;;  %v1345_v57 = vmul.f32 0.015625, %v1225_v55  ;;  %2595 = vmatprep.mubr.msk.bf16.mxu1 %vm732_vm1, %v1778_v2  ;;  %v1528_v50 = vmul.f32 %v2706_v47, %v3425_v28 }
 0x241   : > { %v2708_v0 = vpop.eup %2707  ;;  %v1228_v39 = vpop.xlane.xlu0 %1227  ;;  %v1596_v33 = vmul.f32 %v3660_v16, %v1527_v10  ;;  %v1664_v60 = vadd.f32 %v3668_v25, %v1595_v11 }
 0x242   : > { %2721 = vrsqrt.f32 %v1408_v7  ;;  %v1409_v56 = vadd.f32 1e-05, %v1345_v57  ;;  %2596 = vmatmul.mubr.msk.bf16.gmra.mxu1 %vm732_vm1, %v1779_v45  ;;  %v1346_v40 = vmul.f32 0.015625, %v1228_v39  ;;  %v1529_v44 = vmul.f32 %v2708_v0, %v3433_v34 }
 0x243   : > { %v2710_v54 = vpop.eup %2709  ;;  %v1231_v46 = vpop.xlane.xlu1 %1230  ;;  %v1665_v61 = vadd.f32 %v3668_v25, %v1596_v33  ;;  %v1597_v37 = vmul.f32 %v3660_v16, %v1528_v50  ;;  %v1728_v19 = vmax.f32 %v1664_v60, 0.0 }
 0x244   : > { %2723 = vrsqrt.f32 %v1409_v56  ;;  %v1410_v28 = vadd.f32 1e-05, %v1346_v40  ;;  %v1347_v63 = vmul.f32 0.015625, %v1231_v46  ;;  %v1598_v22 = vmul.f32 %v3660_v16, %v1529_v44 }
 0x245   : > { %v2712_v51 = vpop.eup %2711  ;;  %v1234_v29 = vpop.xlane.xlu0 %1233  ;;  %v1729_v27 = vmax.f32 %v1665_v61, 0.0  ;;  %v1666_v38 = vadd.f32 %v3668_v25, %v1597_v37  ;;  %v1530_v12 = vmul.f32 %v2710_v54, %v3454_v30 }
 0x246   : > { %2725 = vrsqrt.f32 %v1410_v28  ;;  %v1411_v34 = vadd.f32 1e-05, %v1347_v63  ;;  %v1348_v9 = vmul.f32 0.015625, %v1234_v29  ;;  %v1667_v26 = vadd.f32 %v3668_v25, %v1598_v22 }
 0x247   : > { %v2714_v18 = vpop.eup %2713  ;;  %v1237_v21 = vpop.xlane.xlu1 %1236  ;;  %v1780_v52 = vpack.c.bf16 %v1729_v27, %v1728_v19  ;;  %v1730_v62 = vmax.f32 %v1666_v38, 0.0  ;;  %v1531_v31 = vmul.f32 %v2712_v51, %v3461_v43  ;;  %v1599_v5 = vmul.f32 %v3660_v16, %v1530_v12 }
 0x248   : > { %2727 = vrsqrt.f32 %v1411_v34  ;;  %v1412_v35 = vadd.f32 1e-05, %v1348_v9  ;;  %v1349_v58 = vmul.f32 0.015625, %v1237_v21  ;;  %v1731_v42 = vmax.f32 %v1667_v26, 0.0 }
 0x249   : > { %v2716_v32 = vpop.eup %2715  ;;  %2599 = vmatprep.mubr.msk.bf16.mxu1 %vm732_vm1, %v1780_v52  ;;  %v1240_v30 = vpop.xlane.xlu0 %1239  ;;  %v1600_v23 = vmul.f32 %v3660_v16, %v1531_v31  ;;  %v1668_v1 = vadd.f32 %v3668_v25, %v1599_v5  ;;  %v1532_v41 = vmul.f32 %v2714_v18, %v3451_v36 }
 0x24a   : > { %2729 = vrsqrt.f32 %v1412_v35  ;;  %v1413_v17 = vadd.f32 1e-05, %v1349_v58  ;;  %v1350_v20 = vmul.f32 0.015625, %v1240_v30  ;;  %v1781_v43 = vpack.c.bf16 %v1731_v42, %v1730_v62 }
 0x24b   : > { %v2718_v49 = vpop.eup %2717  ;;  %v1243_v2 = vpop.xlane.xlu1 %1242  ;;  %v1669_v47 = vadd.f32 %v3668_v25, %v1600_v23  ;;  %v1533_v55 = vmul.f32 %v2716_v32, %v3458_v53  ;;  %v1601_v45 = vmul.f32 %v3660_v16, %v1532_v41  ;;  %v1732_v50 = vmax.f32 %v1668_v1, 0.0 }
 0x24c   : > { %2731 = vrsqrt.f32 %v1413_v17  ;;  %v1414_v10 = vadd.f32 1e-05, %v1350_v20  ;;  %v1351_v11 = vmul.f32 0.015625, %v1243_v2  ;;  %2600 = vmatmul.mubr.msk.bf16.gmra.mxu1 %vm732_vm1, %v1781_v43  ;;  %v1534_v7 = vmul.f32 %v2718_v49, %v3478_v24 }
 0x24d   : > { %v2720_v36 = vpop.eup %2719  ;;  %v1246_v57 = vpop.xlane.xlu0 %1245  ;;  %v1733_v0 = vmax.f32 %v1669_v47, 0.0  ;;  %v1602_v39 = vmul.f32 %v3660_v16, %v1533_v55  ;;  %v1670_v33 = vadd.f32 %v3668_v25, %v1601_v45 }
 0x24e   : > { %2733 = vrsqrt.f32 %v1414_v10  ;;  %v1415_v60 = vadd.f32 1e-05, %v1351_v11  ;;  %v1352_v53 = vmul.f32 0.015625, %v1246_v57  ;;  %v1535_v56 = vmul.f32 %v2720_v36, %v3485_v59 }
 0x24f   : > { %v2722_v40 = vpop.eup %2721  ;;  %v1249_v44 = vpop.xlane.xlu1 %1248  ;;  %v1782_v54 = vpack.c.bf16 %v1733_v0, %v1732_v50  ;;  %v1671_v46 = vadd.f32 %v3668_v25, %v1602_v39  ;;  %v1603_v24 = vmul.f32 %v3660_v16, %v1534_v7  ;;  %v1734_v51 = vmax.f32 %v1670_v33, 0.0 }
 0x250   : > { %2735 = vrsqrt.f32 %v1415_v60  ;;  %v1416_v61 = vadd.f32 1e-05, %v1352_v53  ;;  %v1353_v37 = vmul.f32 0.015625, %v1249_v44  ;;  %v1604_v28 = vmul.f32 %v3660_v16, %v1535_v56 }
 0x251   : > { %v2724_v63 = vpop.eup %2723  ;;  %2603 = vmatprep.mubr.msk.bf16.mxu1 %vm732_vm1, %v1782_v54  ;;  %v1252_v22 = vpop.xlane.xlu0 %1251  ;;  %v1735_v29 = vmax.f32 %v1671_v46, 0.0  ;;  %v1672_v59 = vadd.f32 %v3668_v25, %v1603_v24  ;;  %v1536_v19 = vmul.f32 %v2722_v40, %v3475_v48  ;;  %v4214_v24 = vld [vmem:[#allocation18_spill] sm:$0xff] }
 0x252   : > { %2737 = vrsqrt.f32 %v1416_v61  ;;  %v1417_v27 = vadd.f32 1e-05, %v1353_v37  ;;  %v1354_v38 = vmul.f32 0.015625, %v1252_v22  ;;  %v1673_v12 = vadd.f32 %v3668_v25, %v1604_v28 }
 0x253   : > { %v2726_v34 = vpop.eup %2725  ;;  %v1255_v9 = vpop.xlane.xlu1 %1254  ;;  %v1783_v26 = vpack.c.bf16 %v1735_v29, %v1734_v51  ;;  %v1736_v18 = vmax.f32 %v1672_v59, 0.0  ;;  %v1537_v21 = vmul.f32 %v2724_v63, %v3482_v3  ;;  %v1605_v52 = vmul.f32 %v3660_v16, %v1536_v19  ;;  %v4215_v19 = vld [vmem:[#allocation20_spill] sm:$0xff] }
 0x254   : > { %2739 = vrsqrt.f32 %v1417_v27  ;;  %v1418_v62 = vadd.f32 1e-05, %v1354_v38  ;;  %v1355_v31 = vmul.f32 0.015625, %v1255_v9  ;;  %v1737_v5 = vmax.f32 %v1673_v12, 0.0 }
 0x255   : > { %v2728_v35 = vpop.eup %2727  ;;  %2604 = vmatmul.mubr.msk.bf16.gmra.mxu1 %vm732_vm1, %v1783_v26  ;;  %v1258_v48 = vpop.xlane.xlu0 %1257  ;;  %v1606_v58 = vmul.f32 %v3660_v16, %v1537_v21  ;;  %v1674_v42 = vadd.f32 %v3668_v25, %v1605_v52  ;;  %v1538_v32 = vmul.f32 %v2726_v34, %v3502_v15 }
 0x256   : > { %2741 = vrsqrt.f32 %v1418_v62  ;;  %v1419_v30 = vadd.f32 1e-05, %v1355_v31  ;;  %v1356_v23 = vmul.f32 0.015625, %v1258_v48  ;;  %v1784_v3 = vpack.c.bf16 %v1737_v5, %v1736_v18  ;;  %v4216_v62 = vld [vmem:[#allocation17_spill] sm:$0xff] }
 0x257   : > { %v2730_v1 = vpop.eup %2729  ;;  %v1261_v41 = vpop.xlane.xlu1 %1260  ;;  %v1675_v17 = vadd.f32 %v3668_v25, %v1606_v58  ;;  %v1539_v20 = vmul.f32 %v2728_v35, %v3509_v13  ;;  %v1607_v43 = vmul.f32 %v3660_v16, %v1538_v32  ;;  %v1738_v45 = vmax.f32 %v1674_v42, 0.0 }
 0x258   : > { %2743 = vrsqrt.f32 %v1419_v30  ;;  %v1420_v49 = vadd.f32 1e-05, %v1356_v23  ;;  %v1357_v2 = vmul.f32 0.015625, %v1261_v41  ;;  %2607 = vmatprep.mubr.msk.bf16.mxu1 %vm732_vm1, %v1784_v3  ;;  %v1540_v47 = vmul.f32 %v2730_v1, %v3499_v4  ;;  %v4217_v30 = vld [vmem:[#allocation19_spill] sm:$0xff] }
 0x259   : > { %v2732_v15 = vpop.eup %2731  ;;  %v1264_v55 = vpop.xlane.xlu0 %1263  ;;  %v1739_v10 = vmax.f32 %v1675_v17, 0.0  ;;  %v1608_v11 = vmul.f32 %v3660_v16, %v1539_v20  ;;  %v1676_v7 = vadd.f32 %v3668_v25, %v1607_v43  ;;  %v4218_v17 = vld [vmem:[#allocation22_spill] sm:$0xff] }
 0x25a   : > { %2745 = vrsqrt.f32 %v1420_v49  ;;  %v1421_v36 = vadd.f32 1e-05, %v1357_v2  ;;  %v1358_v13 = vmul.f32 0.015625, %v1264_v55  ;;  %v1541_v57 = vmul.f32 %v2732_v15, %v3506_v8 }
 0x25b   : > { %v2734_v50 = vpop.eup %2733  ;;  %v1267_v0 = vpop.xlane.xlu1 %1266  ;;  %v1785_v39 = vpack.c.bf16 %v1739_v10, %v1738_v45  ;;  %v1677_v33 = vadd.f32 %v3668_v25, %v1608_v11  ;;  %v1609_v4 = vmul.f32 %v3660_v16, %v1540_v47  ;;  %v1740_v54 = vmax.f32 %v1676_v7, 0.0  ;;  %v4219_v11 = vld [vmem:[#allocation24_spill] sm:$0xff] }
 0x25c   : > { %2747 = vrsqrt.f32 %v1421_v36  ;;  %v1422_v60 = vadd.f32 1e-05, %v1358_v13  ;;  %v1359_v53 = vmul.f32 0.015625, %v1267_v0  ;;  %v1610_v56 = vmul.f32 %v3660_v16, %v1541_v57 }
 0x25d   : > { %v2736_v40 = vpop.eup %2735  ;;  %2608 = vmatmul.mubr.msk.bf16.gmra.mxu1 %vm732_vm1, %v1785_v39  ;;  %v1270_v44 = vpop.xlane.xlu0 %1269  ;;  %v1741_v46 = vmax.f32 %v1677_v33, 0.0  ;;  %v1678_v8 = vadd.f32 %v3668_v25, %v1609_v4  ;;  %v1542_v61 = vmul.f32 %v2734_v50, %v4214_v24 }
 0x25e   : > { %2749 = vrsqrt.f32 %v1422_v60  ;;  %v1423_v37 = vadd.f32 1e-05, %v1359_v53  ;;  %v1360_v28 = vmul.f32 0.015625, %v1270_v44  ;;  %v1679_v63 = vadd.f32 %v3668_v25, %v1610_v56 }
 0x25f   : > { %v2738_v22 = vpop.eup %2737  ;;  %v1273_v51 = vpop.xlane.xlu1 %1272  ;;  %v1786_v29 = vpack.c.bf16 %v1741_v46, %v1740_v54  ;;  %v1742_v59 = vmax.f32 %v1678_v8, 0.0  ;;  %v1543_v27 = vmul.f32 %v2736_v40, %v4215_v19  ;;  %v1611_v38 = vmul.f32 %v3660_v16, %v1542_v61  ;;  %v4220_v54 = vld [vmem:[#allocation21_spill] sm:$0xff] }
 0x260   : > { %2751 = vrsqrt.f32 %v1423_v37  ;;  %v1424_v12 = vadd.f32 1e-05, %v1360_v28  ;;  %v1361_v34 = vmul.f32 0.015625, %v1273_v51  ;;  %v1743_v9 = vmax.f32 %v1679_v63, 0.0  ;;  %v4221_v51 = vld [vmem:[#allocation23_spill] sm:$0xff] }
 0x261   : > { %v2740_v26 = vpop.eup %2739  ;;  %2611 = vmatprep.mubr.msk.bf16.mxu1 %vm732_vm1, %v1786_v29  ;;  %v1276_v18 = vpop.xlane.xlu0 %1275  ;;  %v1612_v21 = vmul.f32 %v3660_v16, %v1543_v27  ;;  %v1680_v52 = vadd.f32 %v3668_v25, %v1611_v38  ;;  %v1544_v31 = vmul.f32 %v2738_v22, %v4216_v62 }
 0x262   : > { %2753 = vrsqrt.f32 %v1424_v12  ;;  %v1425_v5 = vadd.f32 1e-05, %v1361_v34  ;;  %v1362_v35 = vmul.f32 0.015625, %v1276_v18  ;;  %v1787_v48 = vpack.c.bf16 %v1743_v9, %v1742_v59  ;;  %v4222_v18 = vld [vmem:[#allocation3_spill] sm:$0xff] }
 0x263   : > { %v2742_v58 = vpop.eup %2741  ;;  %v1279_v42 = vpop.xlane.xlu1 %1278  ;;  %v1681_v32 = vadd.f32 %v3668_v25, %v1612_v21  ;;  %v1545_v23 = vmul.f32 %v2740_v26, %v4217_v30  ;;  %v1613_v3 = vmul.f32 %v3660_v16, %v1544_v31  ;;  %v1744_v2 = vmax.f32 %v1680_v52, 0.0 }
 0x264   : > { %2755 = vrsqrt.f32 %v1425_v5  ;;  %v1426_v1 = vadd.f32 1e-05, %v1362_v35  ;;  %v1363_v41 = vmul.f32 0.015625, %v1279_v42  ;;  %v1546_v20 = vmul.f32 %v2742_v58, %v4218_v17  ;;  %v4223_v58 = vld [vmem:[#allocation5_spill] sm:$0xff] }
 0x265   : > { %v2744_v43 = vpop.eup %2743  ;;  %2612 = vmatmul.mubr.msk.bf16.gmra.mxu1 %vm732_vm1, %v1787_v48  ;;  %v1282_v49 = vpop.xlane.xlu0 %1281  ;;  %v1745_v47 = vmax.f32 %v1681_v32, 0.0  ;;  %v1614_v15 = vmul.f32 %v3660_v16, %v1545_v23  ;;  %v1682_v55 = vadd.f32 %v3668_v25, %v1613_v3  ;;  %v4224_v3 = vld [vmem:[#allocation2_spill] sm:$0xff] }
 0x266   : > { %2757 = vrsqrt.f32 %v1426_v1  ;;  %v1427_v45 = vadd.f32 1e-05, %v1363_v41  ;;  %v1364_v10 = vmul.f32 0.015625, %v1282_v49  ;;  %v1547_v7 = vmul.f32 %v2744_v43, %v4219_v11 }
 0x267   : > { %v2746_v36 = vpop.eup %2745  ;;  %v1285_v13 = vpop.xlane.xlu1 %1284  ;;  %v1788_v57 = vpack.c.bf16 %v1745_v47, %v1744_v2  ;;  %v1683_v50 = vadd.f32 %v3668_v25, %v1614_v15  ;;  %v1615_v0 = vmul.f32 %v3660_v16, %v1546_v20  ;;  %v1746_v56 = vmax.f32 %v1682_v55, 0.0  ;;  %v4225_v55 = vld [vmem:[#allocation4_spill] sm:$0xff] }
 0x268   : > { %2759 = vrsqrt.f32 %v1427_v45  ;;  %v1428_v39 = vadd.f32 1e-05, %v1364_v10  ;;  %v1365_v33 = vmul.f32 0.015625, %v1285_v13  ;;  %v1616_v4 = vmul.f32 %v3660_v16, %v1547_v7  ;;  %v3856_v13 = vld [vmem:[%s4121_s2 + $0x1] ss:$0 sm:$0xff] }
 0x269   : > { %v2748_v60 = vpop.eup %2747  ;;  %2615 = vmatprep.mubr.msk.bf16.mxu1 %vm732_vm1, %v1788_v57  ;;  %v1288_v53 = vpop.xlane.xlu0 %1287  ;;  %v1747_v40 = vmax.f32 %v1683_v50, 0.0  ;;  %v1684_v44 = vadd.f32 %v3668_v25, %v1615_v0  ;;  %v1548_v46 = vmul.f32 %v2746_v36, %v4220_v54  ;;  %v4227_v54 = vld [vmem:[#allocation9_spill] sm:$0xff] }
 0x26a   : > { %2761 = vrsqrt.f32 %v1428_v39  ;;  %v1429_v8 = vadd.f32 1e-05, %v1365_v33  ;;  %v1366_v24 = vmul.f32 0.015625, %v1288_v53  ;;  %v1685_v61 = vadd.f32 %v3668_v25, %v1616_v4  ;;  %v4226_v53 = vld [vmem:[#allocation7_spill] sm:$0xff] }
 0x26b   : > { %v2750_v37 = vpop.eup %2749  ;;  %v1291_v28 = vpop.xlane.xlu1 %1290  ;;  %v1789_v63 = vpack.c.bf16 %v1747_v40, %v1746_v56  ;;  %v1748_v22 = vmax.f32 %v1684_v44, 0.0  ;;  %v1549_v29 = vmul.f32 %v2748_v60, %v4221_v51  ;;  %v1617_v59 = vmul.f32 %v3660_v16, %v1548_v46 }
 0x26c   : > { %2763 = vrsqrt.f32 %v1429_v8  ;;  %v1430_v19 = vadd.f32 1e-05, %v1366_v24  ;;  %v1367_v27 = vmul.f32 0.015625, %v1291_v28  ;;  %v1749_v38 = vmax.f32 %v1685_v61, 0.0 }
 0x26d   : > { %v2752_v12 = vpop.eup %2751  ;;  %2616 = vmatmul.mubr.msk.bf16.gmra.mxu1 %vm732_vm1, %v1789_v63  ;;  %v1294_v34 = vpop.xlane.xlu0 %1293  ;;  %v1618_v9 = vmul.f32 %v3660_v16, %v1549_v29  ;;  %v1686_v26 = vadd.f32 %v3668_v25, %v1617_v59  ;;  %v1550_v21 = vmul.f32 %v2750_v37, %v4222_v18 }
 0x26e   : > { %2765 = vrsqrt.f32 %v1430_v19  ;;  %v1431_v52 = vadd.f32 1e-05, %v1367_v27  ;;  %v1368_v62 = vmul.f32 0.015625, %v1294_v34  ;;  %v1790_v31 = vpack.c.bf16 %v1749_v38, %v1748_v22  ;;  %v4228_v22 = vld [vmem:[#allocation6_spill] sm:$0xff]  ;;  %v4229_v38 = vld [vmem:[#allocation8_spill] sm:$0xff] }
 0x26f   : > { %v2754_v5 = vpop.eup %2753  ;;  %v1297_v35 = vpop.xlane.xlu1 %1296  ;;  %v1687_v48 = vadd.f32 %v3668_v25, %v1618_v9  ;;  %v1551_v42 = vmul.f32 %v2752_v12, %v4223_v58  ;;  %v1619_v32 = vmul.f32 %v3660_v16, %v1550_v21  ;;  %v1750_v20 = vmax.f32 %v1686_v26, 0.0  ;;  %v4231_v58 = vld [vmem:[#allocation13_spill] sm:$0xff] }
 0x270   : > { %2767 = vrsqrt.f32 %v1431_v52  ;;  %v1432_v30 = vadd.f32 1e-05, %v1368_v62  ;;  %v1369_v23 = vmul.f32 0.015625, %v1297_v35  ;;  %2619 = vmatprep.mubr.msk.bf16.mxu1 %vm732_vm1, %v1790_v31  ;;  %v1552_v1 = vmul.f32 %v2754_v5, %v4224_v3  ;;  %v4230_v62 = vld [vmem:[#allocation11_spill] sm:$0xff] }
 0x271   : > { %v2756_v41 = vpop.eup %2755  ;;  %v1300_v17 = vpop.xlane.xlu0 %1299  ;;  %v1751_v43 = vmax.f32 %v1687_v48, 0.0  ;;  %v1620_v49 = vmul.f32 %v3660_v16, %v1551_v42  ;;  %v1688_v2 = vadd.f32 %v3668_v25, %v1619_v32 }
 0x272   : > { %2769 = vrsqrt.f32 %v1432_v30  ;;  %v1433_v47 = vadd.f32 1e-05, %v1369_v23  ;;  %v1370_v15 = vmul.f32 0.015625, %v1300_v17  ;;  %v1553_v45 = vmul.f32 %v2756_v41, %v4225_v55  ;;  %v4232_v41 = vld [vmem:[#allocation10_spill] sm:$0xff] }
 0x273   : > { %v2758_v10 = vpop.eup %2757  ;;  %v1303_v11 = vpop.xlane.xlu1 %1302  ;;  %v1791_v7 = vpack.c.bf16 %v1751_v43, %v1750_v20  ;;  %v1689_v36 = vadd.f32 %v3668_v25, %v1620_v49  ;;  %v1621_v57 = vmul.f32 %v3856_v13, %v1552_v1  ;;  %v1752_v33 = vmax.f32 %v1688_v2, 0.0  ;;  %v3864_v25 = vld [vmem:[%s4121_s2 + $0x2] ss:$0 sm:$0xff] }
 0x274   : > { %2771 = vrsqrt.f32 %v1433_v47  ;;  %v1434_v16 = vadd.f32 1e-05, %v1370_v15  ;;  %v1371_v50 = vmul.f32 0.015625, %v1303_v11  ;;  %v1622_v0 = vmul.f32 %v3856_v13, %v1553_v45  ;;  %v4233_v47 = vld [vmem:[#allocation12_spill] sm:$0xff] }
 0x275   : > { %v2760_v39 = vpop.eup %2759  ;;  %2620 = vmatmul.mubr.msk.bf16.gmra.mxu1 %vm732_vm1, %v1791_v7  ;;  %v1753_v4 = vmax.f32 %v1689_v36, 0.0  ;;  %v1690_v60 = vadd.f32 %v3864_v25, %v1621_v57  ;;  %v1554_v56 = vmul.f32 %v2758_v10, %v4226_v53  ;;  %v4234_v57 = vld [vmem:[#allocation14_spill] sm:$0xff] }
 0x276   : > { %2773 = vrsqrt.f32 %v1434_v16  ;;  %v1435_v40 = vadd.f32 1e-05, %v1371_v50  ;;  %v1691_v44 = vadd.f32 %v3864_v25, %v1622_v0  ;;  %v1555_v46 = vmul.f32 %v2760_v39, %v4227_v54 }
 0x277   : > { %v2762_v8 = vpop.eup %2761  ;;  %v1792_v24 = vpack.c.bf16 %v1753_v4, %v1752_v33  ;;  %v1754_v61 = vmax.f32 %v1690_v60, 0.0  ;;  %v1623_v37 = vmul.f32 %v3856_v13, %v1554_v56  ;;  %v4235_v33 = vld [vmem:[#allocation25_spill] sm:$0xff] }
 0x278   : > { %2775 = vrsqrt.f32 %v1435_v40  ;;  %v1755_v28 = vmax.f32 %v1691_v44, 0.0  ;;  %v1624_v63 = vmul.f32 %v3856_v13, %v1555_v46  ;;  %v1556_v51 = vmul.f32 %v2762_v8, %v4228_v22 }
 0x279   : > { %v2764_v29 = vpop.eup %2763  ;;  %2623 = vmatprep.mubr.msk.bf16.mxu1 %vm732_vm1, %v1792_v24  ;;  %v1692_v59 = vadd.f32 %v3864_v25, %v1623_v37 }
 0x27a   : > { %v1793_v19 = vpack.c.bf16 %v1755_v28, %v1754_v61  ;;  %v1693_v27 = vadd.f32 %v3864_v25, %v1624_v63  ;;  %v1557_v12 = vmul.f32 %v2764_v29, %v4229_v38  ;;  %v1625_v34 = vmul.f32 %v3856_v13, %v1556_v51 }
 0x27b   : > { %v2766_v9 = vpop.eup %2765  ;;  %v1756_v26 = vmax.f32 %v1692_v59, 0.0 }
 0x27c   : > { %v1757_v18 = vmax.f32 %v1693_v27, 0.0  ;;  %v1626_v21 = vmul.f32 %v3856_v13, %v1557_v12  ;;  %v1694_v52 = vadd.f32 %v3864_v25, %v1625_v34  ;;  %v1558_v31 = vmul.f32 %v2766_v9, %v4230_v62 }
 0x27d   : > { %v2768_v5 = vpop.eup %2767  ;;  %2624 = vmatmul.mubr.msk.bf16.gmra.mxu1 %vm732_vm1, %v1793_v19 }
 0x27e   : > { %v1794_v35 = vpack.c.bf16 %v1757_v18, %v1756_v26  ;;  %v1695_v48 = vadd.f32 %v3864_v25, %v1626_v21  ;;  %v1559_v42 = vmul.f32 %v2768_v5, %v4231_v58  ;;  %v1627_v30 = vmul.f32 %v3856_v13, %v1558_v31 }
 0x27f   : > { %v2770_v32 = vpop.eup %2769  ;;  %v1758_v23 = vmax.f32 %v1694_v52, 0.0 }
 0x280   : > { %2627 = vmatprep.mubr.msk.bf16.mxu1 %vm732_vm1, %v1794_v35  ;;  %v1759_v3 = vmax.f32 %v1695_v48, 0.0  ;;  %v1628_v1 = vmul.f32 %v3856_v13, %v1559_v42  ;;  %v1560_v17 = vmul.f32 %v2770_v32, %v4232_v41  ;;  %v1696_v43 = vadd.f32 %v3864_v25, %v1627_v30 }
 0x281   : > { %v2772_v20 = vpop.eup %2771 }
 0x282   : > { %v1795_v49 = vpack.c.bf16 %v1759_v3, %v1758_v23  ;;  %v1697_v2 = vadd.f32 %v3864_v25, %v1628_v1  ;;  %v1561_v15 = vmul.f32 %v2772_v20, %v4233_v47  ;;  %v1629_v55 = vmul.f32 %v3856_v13, %v1560_v17 }
 0x283   : > { %v2774_v45 = vpop.eup %2773  ;;  %v1760_v10 = vmax.f32 %v1696_v43, 0.0 }
 0x284   : > { %v1761_v11 = vmax.f32 %v1697_v2, 0.0  ;;  %v1630_v7 = vmul.f32 %v3856_v13, %v1561_v15  ;;  %v1698_v36 = vadd.f32 %v3864_v25, %v1629_v55  ;;  %v1562_v16 = vmul.f32 %v2774_v45, %v4234_v57 }
 0x285   : > { %v2776_v50 = vpop.eup %2775  ;;  %2628 = vmatmul.mubr.msk.bf16.gmra.mxu1 %vm732_vm1, %v1795_v49 }
 0x286   : > { %v1796_v0 = vpack.c.bf16 %v1761_v11, %v1760_v10  ;;  %v1699_v39 = vadd.f32 %v3864_v25, %v1630_v7  ;;  %v1563_v4 = vmul.f32 %v2776_v50, %v4235_v33  ;;  %v1631_v60 = vmul.f32 %v3856_v13, %v1562_v16 }
 0x287   : > { %v1762_v53 = vmax.f32 %v1698_v36, 0.0 }
 0x288   : > { %2631 = vmatprep.mubr.msk.bf16.mxu1 %vm732_vm1, %v1796_v0  ;;  %v1763_v56 = vmax.f32 %v1699_v39, 0.0  ;;  %v1632_v40 = vmul.f32 %v3856_v13, %v1563_v4  ;;  %v1700_v44 = vadd.f32 %v3864_v25, %v1631_v60 }
 0x28a   : > { %v1797_v54 = vpack.c.bf16 %v1763_v56, %v1762_v53  ;;  %v1701_v46 = vadd.f32 %v3864_v25, %v1632_v40  ;;  %v1764_v8 = vmax.f32 %v1700_v44, 0.0 }
 0x28c   : > { %v1765_v24 = vmax.f32 %v1701_v46, 0.0 }
 0x28d   : > { %2632 = vmatmul.mubr.msk.bf16.gmra.mxu1 %vm732_vm1, %v1797_v54 }
 0x28e   : > { %v1798_v61 = vpack.c.bf16 %v1765_v24, %v1764_v8 }
 0x290   : > { %2635 = vmatprep.mubr.msk.bf16.mxu1 %vm732_vm1, %v1798_v61 }
 0x2b6   : > { %v1306_v37 = vpop.xlane.xlu0 %1305 }
 0x2b7   : > { %v1372_v28 = vmul.f32 0.015625, %v1306_v37 }
 0x2b8   : > { %v1309_v63 = vpop.xlane.xlu1 %1308 }
 0x2b9   : > { %v1436_v22 = vadd.f32 1e-05, %v1372_v28  ;;  %v1373_v51 = vmul.f32 0.015625, %v1309_v63 }
 0x2bb   : > { %2777 = vrsqrt.f32 %v1436_v22  ;;  %v1437_v29 = vadd.f32 1e-05, %v1373_v51 }
 0x2bd   : > { %2779 = vrsqrt.f32 %v1437_v29 }
 0x2c8   : > { %v2778_v59 = vpop.eup %2777 }
 0x2c9   : > { %v1564_v19 = vmul.f32 %v2778_v59, %v3716_v6  ;;  %v3915_v6 = vld [vmem:[%s4123_s4] ss:$0 sm:$0xff] }
 0x2ca   : > { %v2780_v27 = vpop.eup %2779 }
 0x2cb   : > { %v1565_v38 = vmul.f32 %v2780_v27, %v3723_v14  ;;  %v1633_v12 = vmul.f32 %v3856_v13, %v1564_v19 }
 0x2cd   : > { %v1634_v34 = vmul.f32 %v3856_v13, %v1565_v38  ;;  %v1702_v9 = vadd.f32 %v3864_v25, %v1633_v12 }
 0x2cf   : > { %v1703_v26 = vadd.f32 %v3864_v25, %v1634_v34  ;;  %v1766_v18 = vmax.f32 %v1702_v9, 0.0 }
 0x2d1   : > { %v1767_v21 = vmax.f32 %v1703_v26, 0.0 }
 0x2d3   : > { %v1799_v52 = vpack.c.bf16 %v1767_v21, %v1766_v18 }
 0x2d5   : > { %2636 = vmatmul.mubr.msk.bf16.gmra.mxu1 %vm732_vm1, %v1799_v52 }
 0x2d9   : > { %v2577_v14 = vpop.f32.mrf.mxu1 }
 0x2da   : > { %v1978_v13 = vadd.f32 %v2577_v14, %v3915_v6 }
 0x2db   : > { %v1969_v25 = vpop.f32.mrf.mxu1 }
 0x2dc   : > { %2226 = vst.msk [vmem:[%s3922_s29 + $0x10] sm:$0xff] %vm732_vm1, %v1978_v13  ;;  %v1970_v62 = vadd.f32 %v3915_v6, %v1969_v25 }
 0x2dd   : > { %v2578_v31 = vpop.f32.mrf.mxu1 }
 0x2de   : > { %2224 = vst.msk [vmem:[%s3922_s29] sm:$0xff] %vm732_vm1, %v1970_v62  ;;  %v1981_v5 = vadd.f32 %v2578_v31, %v3915_v6 }
 0x2df   : > { %v1972_v35 = vpop.f32.mrf.mxu1 }
 0x2e0   : > { %2227 = vst.msk [vmem:[%s3922_s29 + $0x18] sm:$0xff] %vm732_vm1, %v1981_v5  ;;  %v1973_v48 = vadd.f32 %v3915_v6, %v1972_v35 }
 0x2e2   : > { %2225 = vst.msk [vmem:[%s3922_s29 + $0x8] sm:$0xff] %vm732_vm1, %v1973_v48  ;;  %v2581_v58 = vpop.f32.mrf.mxu1 }
 0x2e3   : > { %v1994_v42 = vadd.f32 %v2581_v58, %v3915_v6 }
 0x2e4   : > { %v1985_v32 = vpop.f32.mrf.mxu1 }
 0x2e5   : > { %2230 = vst.msk [vmem:[%s3922_s29 + $0x30] sm:$0xff] %vm732_vm1, %v1994_v42  ;;  %v1986_v30 = vadd.f32 %v3915_v6, %v1985_v32 }
 0x2e6   : > { %v2582_v23 = vpop.f32.mrf.mxu1 }
 0x2e7   : > { %2228 = vst.msk [vmem:[%s3922_s29 + $0x20] sm:$0xff] %vm732_vm1, %v1986_v30  ;;  %v1997_v3 = vadd.f32 %v2582_v23, %v3915_v6 }
 0x2e8   : > { %v1988_v1 = vpop.f32.mrf.mxu1 }
 0x2e9   : > { %2231 = vst.msk [vmem:[%s3922_s29 + $0x38] sm:$0xff] %vm732_vm1, %v1997_v3  ;;  %v1989_v41 = vadd.f32 %v3915_v6, %v1988_v1 }
 0x2ea   : > { %v2585_v17 = vpop.f32.mrf.mxu1 }
 0x2eb   : > { %2229 = vst.msk [vmem:[%s3922_s29 + $0x28] sm:$0xff] %vm732_vm1, %v1989_v41  ;;  %v2010_v20 = vadd.f32 %v2585_v17, %v3915_v6 }
 0x2ec   : > { %v2001_v43 = vpop.f32.mrf.mxu1 }
 0x2ed   : > { %2234 = vst.msk [vmem:[%s3922_s29 + $0x50] sm:$0xff] %vm732_vm1, %v2010_v20  ;;  %v2002_v49 = vadd.f32 %v3915_v6, %v2001_v43 }
 0x2ee   : > { %v2586_v2 = vpop.f32.mrf.mxu1 }
 0x2ef   : > { %2232 = vst.msk [vmem:[%s3922_s29 + $0x40] sm:$0xff] %vm732_vm1, %v2002_v49  ;;  %v2013_v47 = vadd.f32 %v2586_v2, %v3915_v6 }
 0x2f0   : > { %v2004_v15 = vpop.f32.mrf.mxu1 }
 0x2f1   : > { %2235 = vst.msk [vmem:[%s3922_s29 + $0x58] sm:$0xff] %vm732_vm1, %v2013_v47  ;;  %v2005_v55 = vadd.f32 %v3915_v6, %v2004_v15 }
 0x2f2   : > { %v2589_v45 = vpop.f32.mrf.mxu1 }
 0x2f3   : > { %2233 = vst.msk [vmem:[%s3922_s29 + $0x48] sm:$0xff] %vm732_vm1, %v2005_v55  ;;  %v2026_v10 = vadd.f32 %v2589_v45, %v3915_v6 }
 0x2f4   : > { %v2017_v11 = vpop.f32.mrf.mxu1 }
 0x2f5   : > { %2238 = vst.msk [vmem:[%s3922_s29 + $0x70] sm:$0xff] %vm732_vm1, %v2026_v10  ;;  %v2018_v7 = vadd.f32 %v3915_v6, %v2017_v11 }
 0x2f6   : > { %v2590_v36 = vpop.f32.mrf.mxu1 }
 0x2f7   : > { %2236 = vst.msk [vmem:[%s3922_s29 + $0x60] sm:$0xff] %vm732_vm1, %v2018_v7  ;;  %v2029_v57 = vadd.f32 %v2590_v36, %v3915_v6 }
 0x2f8   : > { %v2020_v16 = vpop.f32.mrf.mxu1 }
 0x2f9   : > { %2239 = vst.msk [vmem:[%s3922_s29 + $0x78] sm:$0xff] %vm732_vm1, %v2029_v57  ;;  %v2021_v50 = vadd.f32 %v3915_v6, %v2020_v16 }
 0x2fa   : > { %v2593_v0 = vpop.f32.mrf.mxu1 }
 0x2fb   : > { %2237 = vst.msk [vmem:[%s3922_s29 + $0x68] sm:$0xff] %vm732_vm1, %v2021_v50  ;;  %v2042_v39 = vadd.f32 %v2593_v0, %v3915_v6 }
 0x2fc   : > { %v2033_v33 = vpop.f32.mrf.mxu1 }
 0x2fd   : > { %2242 = vst.msk [vmem:[%s3922_s29 + $0x90] sm:$0xff] %vm732_vm1, %v2042_v39  ;;  %v2034_v4 = vadd.f32 %v3915_v6, %v2033_v33 }
 0x2fe   : > { %v2594_v60 = vpop.f32.mrf.mxu1 }
 0x2ff   : > { %2240 = vst.msk [vmem:[%s3922_s29 + $0x80] sm:$0xff] %vm732_vm1, %v2034_v4  ;;  %v2045_v53 = vadd.f32 %v2594_v60, %v3915_v6 }
 0x300   : > { %v2036_v56 = vpop.f32.mrf.mxu1 }
 0x301   : > { %2243 = vst.msk [vmem:[%s3922_s29 + $0x98] sm:$0xff] %vm732_vm1, %v2045_v53  ;;  %v2037_v40 = vadd.f32 %v3915_v6, %v2036_v56 }
 0x302   : > { %v2597_v44 = vpop.f32.mrf.mxu1 }
 0x303   : > { %2241 = vst.msk [vmem:[%s3922_s29 + $0x88] sm:$0xff] %vm732_vm1, %v2037_v40  ;;  %v2058_v54 = vadd.f32 %v2597_v44, %v3915_v6 }
 0x304   : > { %v2049_v46 = vpop.f32.mrf.mxu1 }
 0x305   : > { %2246 = vst.msk [vmem:[%s3922_s29 + $0xb0] sm:$0xff] %vm732_vm1, %v2058_v54  ;;  %v2050_v8 = vadd.f32 %v3915_v6, %v2049_v46 }
 0x306   : > { %v2598_v24 = vpop.f32.mrf.mxu1 }
 0x307   : > { %2244 = vst.msk [vmem:[%s3922_s29 + $0xa0] sm:$0xff] %vm732_vm1, %v2050_v8  ;;  %v2061_v61 = vadd.f32 %v2598_v24, %v3915_v6 }
 0x308   : > { %v2052_v37 = vpop.f32.mrf.mxu1 }
 0x309   : > { %2247 = vst.msk [vmem:[%s3922_s29 + $0xb8] sm:$0xff] %vm732_vm1, %v2061_v61  ;;  %v2053_v28 = vadd.f32 %v3915_v6, %v2052_v37 }
 0x30b   : > { %2245 = vst.msk [vmem:[%s3922_s29 + $0xa8] sm:$0xff] %vm732_vm1, %v2053_v28 }
 0x30c   : > { %v2601_v63 = vpop.f32.mrf.mxu1 }
 0x30d   : > { %v2074_v22 = vadd.f32 %v2601_v63, %v3915_v6 }
 0x30e   : > { %v2065_v51 = vpop.f32.mrf.mxu1 }
 0x30f   : > { %2250 = vst.msk [vmem:[%s3922_s29 + $0xd0] sm:$0xff] %vm732_vm1, %v2074_v22  ;;  %v2066_v29 = vadd.f32 %v3915_v6, %v2065_v51 }
 0x310   : > { %v2602_v59 = vpop.f32.mrf.mxu1 }
 0x311   : > { %2248 = vst.msk [vmem:[%s3922_s29 + $0xc0] sm:$0xff] %vm732_vm1, %v2066_v29  ;;  %v2077_v19 = vadd.f32 %v2602_v59, %v3915_v6 }
 0x312   : > { %v2068_v27 = vpop.f32.mrf.mxu1 }
 0x313   : > { %2251 = vst.msk [vmem:[%s3922_s29 + $0xd8] sm:$0xff] %vm732_vm1, %v2077_v19  ;;  %v2069_v38 = vadd.f32 %v3915_v6, %v2068_v27 }
 0x315   : > { %2249 = vst.msk [vmem:[%s3922_s29 + $0xc8] sm:$0xff] %vm732_vm1, %v2069_v38  ;;  %v2605_v12 = vpop.f32.mrf.mxu1 }
 0x316   : > { %v2090_v34 = vadd.f32 %v2605_v12, %v3915_v6 }
 0x317   : > { %v2081_v9 = vpop.f32.mrf.mxu1 }
 0x318   : > { %2254 = vst.msk [vmem:[%s3922_s29 + $0xf0] sm:$0xff] %vm732_vm1, %v2090_v34  ;;  %v2082_v26 = vadd.f32 %v3915_v6, %v2081_v9 }
 0x319   : > { %v2606_v18 = vpop.f32.mrf.mxu1 }
 0x31a   : > { %2252 = vst.msk [vmem:[%s3922_s29 + $0xe0] sm:$0xff] %vm732_vm1, %v2082_v26  ;;  %v2093_v21 = vadd.f32 %v2606_v18, %v3915_v6 }
 0x31b   : > { %v2084_v52 = vpop.f32.mrf.mxu1 }
 0x31c   : > { %2255 = vst.msk [vmem:[%s3922_s29 + $0xf8] sm:$0xff] %vm732_vm1, %v2093_v21  ;;  %v2085_v14 = vadd.f32 %v3915_v6, %v2084_v52 }
 0x31d   : > { %v2609_v13 = vpop.f32.mrf.mxu1 }
 0x31e   : > { %2253 = vst.msk [vmem:[%s3922_s29 + $0xe8] sm:$0xff] %vm732_vm1, %v2085_v14  ;;  %v2106_v25 = vadd.f32 %v2609_v13, %v3915_v6 }
 0x31f   : > { %v2097_v62 = vpop.f32.mrf.mxu1 }
 0x320   : > { %2258 = vst.msk [vmem:[%s3922_s29 + $0x110] sm:$0xff] %vm732_vm1, %v2106_v25  ;;  %v2098_v31 = vadd.f32 %v3915_v6, %v2097_v62 }
 0x321   : > { %v2610_v5 = vpop.f32.mrf.mxu1 }
 0x322   : > { %2256 = vst.msk [vmem:[%s3922_s29 + $0x100] sm:$0xff] %vm732_vm1, %v2098_v31  ;;  %v2109_v35 = vadd.f32 %v2610_v5, %v3915_v6 }
 0x323   : > { %v2100_v48 = vpop.f32.mrf.mxu1 }
 0x324   : > { %2259 = vst.msk [vmem:[%s3922_s29 + $0x118] sm:$0xff] %vm732_vm1, %v2109_v35  ;;  %v2101_v58 = vadd.f32 %v3915_v6, %v2100_v48 }
 0x325   : > { %v2613_v42 = vpop.f32.mrf.mxu1 }
 0x326   : > { %2257 = vst.msk [vmem:[%s3922_s29 + $0x108] sm:$0xff] %vm732_vm1, %v2101_v58  ;;  %v2122_v32 = vadd.f32 %v2613_v42, %v3915_v6 }
 0x327   : > { %v2113_v30 = vpop.f32.mrf.mxu1 }
 0x328   : > { %2262 = vst.msk [vmem:[%s3922_s29 + $0x130] sm:$0xff] %vm732_vm1, %v2122_v32  ;;  %v2114_v23 = vadd.f32 %v3915_v6, %v2113_v30 }
 0x329   : > { %v2614_v3 = vpop.f32.mrf.mxu1 }
 0x32a   : > { %2260 = vst.msk [vmem:[%s3922_s29 + $0x120] sm:$0xff] %vm732_vm1, %v2114_v23  ;;  %v2125_v1 = vadd.f32 %v2614_v3, %v3915_v6 }
 0x32b   : > { %v2116_v41 = vpop.f32.mrf.mxu1 }
 0x32c   : > { %2263 = vst.msk [vmem:[%s3922_s29 + $0x138] sm:$0xff] %vm732_vm1, %v2125_v1  ;;  %v2117_v17 = vadd.f32 %v3915_v6, %v2116_v41 }
 0x32d   : > { %v2617_v20 = vpop.f32.mrf.mxu1 }
 0x32e   : > { %2261 = vst.msk [vmem:[%s3922_s29 + $0x128] sm:$0xff] %vm732_vm1, %v2117_v17  ;;  %v2138_v43 = vadd.f32 %v2617_v20, %v3915_v6 }
 0x32f   : > { %v2129_v49 = vpop.f32.mrf.mxu1 }
 0x330   : > { %2266 = vst.msk [vmem:[%s3922_s29 + $0x150] sm:$0xff] %vm732_vm1, %v2138_v43  ;;  %v2130_v2 = vadd.f32 %v3915_v6, %v2129_v49 }
 0x331   : > { %v2618_v47 = vpop.f32.mrf.mxu1 }
 0x332   : > { %2264 = vst.msk [vmem:[%s3922_s29 + $0x140] sm:$0xff] %vm732_vm1, %v2130_v2  ;;  %v2141_v15 = vadd.f32 %v2618_v47, %v3915_v6 }
 0x333   : > { %v2132_v55 = vpop.f32.mrf.mxu1 }
 0x334   : > { %2267 = vst.msk [vmem:[%s3922_s29 + $0x158] sm:$0xff] %vm732_vm1, %v2141_v15  ;;  %v2133_v45 = vadd.f32 %v3915_v6, %v2132_v55 }
 0x335   : > { %v2621_v10 = vpop.f32.mrf.mxu1 }
 0x336   : > { %2265 = vst.msk [vmem:[%s3922_s29 + $0x148] sm:$0xff] %vm732_vm1, %v2133_v45  ;;  %v2154_v11 = vadd.f32 %v2621_v10, %v3915_v6 }
 0x337   : > { %v2145_v7 = vpop.f32.mrf.mxu1 }
 0x338   : > { %2270 = vst.msk [vmem:[%s3922_s29 + $0x170] sm:$0xff] %vm732_vm1, %v2154_v11  ;;  %v2146_v36 = vadd.f32 %v3915_v6, %v2145_v7 }
 0x339   : > { %v2622_v57 = vpop.f32.mrf.mxu1 }
 0x33a   : > { %2268 = vst.msk [vmem:[%s3922_s29 + $0x160] sm:$0xff] %vm732_vm1, %v2146_v36  ;;  %v2157_v16 = vadd.f32 %v2622_v57, %v3915_v6 }
 0x33b   : > { %v2148_v50 = vpop.f32.mrf.mxu1 }
 0x33c   : > { %2271 = vst.msk [vmem:[%s3922_s29 + $0x178] sm:$0xff] %vm732_vm1, %v2157_v16  ;;  %v2149_v0 = vadd.f32 %v3915_v6, %v2148_v50 }
 0x33d   : > { %v2625_v39 = vpop.f32.mrf.mxu1 }
 0x33e   : > { %2269 = vst.msk [vmem:[%s3922_s29 + $0x168] sm:$0xff] %vm732_vm1, %v2149_v0  ;;  %v2170_v33 = vadd.f32 %v2625_v39, %v3915_v6 }
 0x33f   : > { %v2161_v4 = vpop.f32.mrf.mxu1 }
 0x340   : > { %2274 = vst.msk [vmem:[%s3922_s29 + $0x190] sm:$0xff] %vm732_vm1, %v2170_v33  ;;  %v2162_v60 = vadd.f32 %v3915_v6, %v2161_v4 }
 0x341   : > { %v2626_v53 = vpop.f32.mrf.mxu1 }
 0x342   : > { %2272 = vst.msk [vmem:[%s3922_s29 + $0x180] sm:$0xff] %vm732_vm1, %v2162_v60  ;;  %v2173_v56 = vadd.f32 %v2626_v53, %v3915_v6 }
 0x343   : > { %v2164_v40 = vpop.f32.mrf.mxu1 }
 0x344   : > { %2275 = vst.msk [vmem:[%s3922_s29 + $0x198] sm:$0xff] %vm732_vm1, %v2173_v56  ;;  %v2165_v44 = vadd.f32 %v3915_v6, %v2164_v40 }
 0x345   : > { %v2629_v54 = vpop.f32.mrf.mxu1 }
 0x346   : > { %2273 = vst.msk [vmem:[%s3922_s29 + $0x188] sm:$0xff] %vm732_vm1, %v2165_v44  ;;  %v2186_v46 = vadd.f32 %v2629_v54, %v3915_v6 }
 0x347   : > { %v2177_v8 = vpop.f32.mrf.mxu1 }
 0x348   : > { %2278 = vst.msk [vmem:[%s3922_s29 + $0x1b0] sm:$0xff] %vm732_vm1, %v2186_v46  ;;  %v2178_v24 = vadd.f32 %v3915_v6, %v2177_v8 }
 0x349   : > { %v2630_v61 = vpop.f32.mrf.mxu1 }
 0x34a   : > { %2276 = vst.msk [vmem:[%s3922_s29 + $0x1a0] sm:$0xff] %vm732_vm1, %v2178_v24  ;;  %v2189_v37 = vadd.f32 %v2630_v61, %v3915_v6 }
 0x34b   : > { %v2180_v28 = vpop.f32.mrf.mxu1 }
 0x34c   : > { %2279 = vst.msk [vmem:[%s3922_s29 + $0x1b8] sm:$0xff] %vm732_vm1, %v2189_v37  ;;  %v2181_v63 = vadd.f32 %v3915_v6, %v2180_v28 }
 0x34d   : > { %v2633_v22 = vpop.f32.mrf.mxu1 }
 0x34e   : > { %2277 = vst.msk [vmem:[%s3922_s29 + $0x1a8] sm:$0xff] %vm732_vm1, %v2181_v63  ;;  %v2202_v51 = vadd.f32 %v2633_v22, %v3915_v6 }
 0x34f   : > { %v2193_v29 = vpop.f32.mrf.mxu1 }
 0x350   : > { %2282 = vst.msk [vmem:[%s3922_s29 + $0x1d0] sm:$0xff] %vm732_vm1, %v2202_v51  ;;  %v2194_v59 = vadd.f32 %v3915_v6, %v2193_v29 }
 0x351   : > { %v2634_v19 = vpop.f32.mrf.mxu1 }
 0x352   : > { %2280 = vst.msk [vmem:[%s3922_s29 + $0x1c0] sm:$0xff] %vm732_vm1, %v2194_v59  ;;  %v2205_v27 = vadd.f32 %v2634_v19, %v3915_v6 }
 0x353   : > { %v2196_v38 = vpop.f32.mrf.mxu1 }
 0x354   : > { %2283 = vst.msk [vmem:[%s3922_s29 + $0x1d8] sm:$0xff] %vm732_vm1, %v2205_v27  ;;  %v2197_v12 = vadd.f32 %v3915_v6, %v2196_v38 }
 0x356   : > { %2281 = vst.msk [vmem:[%s3922_s29 + $0x1c8] sm:$0xff] %vm732_vm1, %v2197_v12 }
 0x395   : > { %v2637_v34 = vpop.f32.mrf.mxu1 }
 0x396   : > { %v2218_v9 = vadd.f32 %v2637_v34, %v3915_v6 }
 0x397   : > { %v2209_v26 = vpop.f32.mrf.mxu1 }
 0x398   : > { %2286 = vst.msk [vmem:[%s3922_s29 + $0x1f0] sm:$0xff] %vm732_vm1, %v2218_v9  ;;  %v2210_v18 = vadd.f32 %v3915_v6, %v2209_v26 }
 0x399   : > { %v2638_v21 = vpop.f32.mrf.mxu1 }
 0x39a   : > { %2284 = vst.msk [vmem:[%s3922_s29 + $0x1e0] sm:$0xff] %vm732_vm1, %v2210_v18  ;;  %v2221_v52 = vadd.f32 %v2638_v21, %v3915_v6 }
 0x39b   : > { %v2212_v14 = vpop.f32.mrf.mxu1 }
 0x39c   : > { %2287 = vst.msk [vmem:[%s3922_s29 + $0x1f8] sm:$0xff] %vm732_vm1, %v2221_v52  ;;  %v2213_v13 = vadd.f32 %v3915_v6, %v2212_v14 }
 0x39e   : > { %2285 = vst.msk [vmem:[%s3922_s29 + $0x1e8] sm:$0xff] %vm732_vm1, %v2213_v13 }
 0x39f PF: > { %s15_s18 = sadd.s32 1, %s2789_s18  }
 0x3a0   : > { %p12_p4 = scmp.ge.s32.totalorder %s15_s18, 4  }
 0x3a2   :  { %14 = sbr.rel (!%p12_p4) target bundleno = 1 (0x1), region = 70 }

</bundles_post_ra>
